<compile_context>
chip_gen: v7x
topology: tpu7x:2x2x1
jax: 0.10.0
libtpu: 0.0.40
codegen_flags: <defaults>
</compile_context>

<pallas_src>
import numpy as np
import jax
import jax.numpy as jnp
from jax import lax
from jax.experimental import pallas as pl
from jax.experimental.pallas import tpu as pltpu

_LANE = 128
_SUBLANE = 8
_VMEM_LIMIT = 32 * 1024 * 1024  # explicit scoped-VMEM budget, safe on v5e/v6e/v7x


def _round_up(x, m):
    return ((x + m - 1) // m) * m


# ----------------------------- Pallas kernels ------------------------------------

def _mention_kernel(x_ref, st_ref, en_ref,
                    wa1_ref, ba1_ref, wa2_ref, ba2_ref, wa3_ref, ba3_ref,
                    wm1_ref, bm1_ref, wm2_ref, bm2_ref, wm3_ref, bm3_ref,
                    w1a_ref, w1b_ref, b1_ref,
                    g_ref, m_ref, pa_ref, pb_ref):
    """Per-document fused kernel.

    Computes: attention Score MLP over tokens, span features g = [start | end | attn-weighted
    sum] via in-kernel iota one-hot / membership masks, mention Score MLP, and the i/j-separable
    halves of the pairwise first Linear (A = g @ w1a + b1, B = g @ w1b).
    x:(T,E) bf16, st/en:(S,1) int32 (-1 = padding row).
    """
    f32, bf16 = jnp.float32, jnp.bfloat16
    T, E = x_ref.shape
    S = st_ref.shape[0]

    x = x_ref[...]                                                      # (T, E) bf16

    # --- attention Score MLP (bf16 matmuls, f32 accumulation) ---------------------
    h = jnp.maximum(jnp.dot(x, wa1_ref[...], preferred_element_type=f32) + ba1_ref[...], 0.0)
    h = jnp.maximum(jnp.dot(h.astype(bf16), wa2_ref[...], preferred_element_type=f32)
                    + ba2_ref[...], 0.0)
    attn = jnp.dot(h.astype(bf16), wa3_ref[...], preferred_element_type=f32) + ba3_ref[...]  # (T,1)

    # --- span selection masks built in-kernel from (start, end) indices -----------
    tok = lax.broadcasted_iota(jnp.int32, (S, T), 1)
    st = st_ref[...]                                                    # (S, 1) int32
    en = en_ref[...]
    so = jnp.where(tok == st, 1.0, 0.0).astype(bf16)                    # start one-hot
    eo = jnp.where(tok == en, 1.0, 0.0).astype(bf16)                    # end one-hot
    sm = jnp.where(jnp.logical_and(tok >= st, tok <= en), 1.0, 0.0).astype(bf16)

    xa = (x.astype(f32) * attn).astype(bf16)                            # attention-weighted embeds
    gs = jnp.dot(so, x, preferred_element_type=f32)                     # (S, E)
    ge = jnp.dot(eo, x, preferred_element_type=f32)                     # (S, E)
    gw = jnp.dot(sm, xa, preferred_element_type=f32)                    # (S, E)

    g = jnp.concatenate([gs, ge, gw], axis=-1)                          # (S, 3E) single slab
    g_ref[...] = g
    gb = g.astype(bf16)

    # --- mention Score MLP ---------------------------------------------------------
    hm = jnp.maximum(jnp.dot(gb, wm1_ref[...], preferred_element_type=f32) + bm1_ref[...], 0.0)
    hm = jnp.maximum(jnp.dot(hm.astype(bf16), wm2_ref[...], preferred_element_type=f32)
                     + bm2_ref[...], 0.0)
    m_ref[...] = jnp.dot(hm.astype(bf16), wm3_ref[...], preferred_element_type=f32) + bm3_ref[...]

    # --- i/j-separable halves of the pairwise first Linear (once per doc) ----------
    pa_ref[...] = jnp.dot(gb, w1a_ref[...], preferred_element_type=f32) + b1_ref[...]
    pb_ref[...] = jnp.dot(gb, w1b_ref[...], preferred_element_type=f32)


def _pairwise_kernel(ai_ref, bj_ref, gi_ref, gj_ref, mi_ref, mj_ref,
                     w1c_ref, w2_ref, b2_ref, w3_ref, b3_ref, o_ref):
    """Pairwise coref scores for one (TI x TJ) pair tile of one document.

    ai:(TI,1,H) = g_i@w1a + b1, bj:(TJ,H) = g_j@w1b, gi:(TI,1,G), gj:(TJ,G),
    mi:(TI,1), mj:(1,TJ) mention scores. Output o:(TI,TJ) = clamp(mean(m_i, m_j, pair_ij), 0, 1).
    """
    f32, bf16 = jnp.float32, jnp.bfloat16
    TI = ai_ref.shape[0]
    TJ, H = bj_ref.shape
    G = gj_ref.shape[1]

    # pair product term, tile-bounded (TI*TJ, G): no replication matmuls, no full (P,G) tensor
    gi3 = jnp.broadcast_to(gi_ref[...], (TI, TJ, G))     # sublane broadcast of g_i rows
    gj3 = jnp.broadcast_to(gj_ref[...], (TI, TJ, G))     # leading-dim replication of g_j
    gij = (gi3 * gj3).reshape(TI * TJ, G)

    c = jnp.dot(gij.astype(bf16), w1c_ref[...], preferred_element_type=f32)   # (TI*TJ, H)
    h = (jnp.broadcast_to(ai_ref[...], (TI, TJ, H))
         + jnp.broadcast_to(bj_ref[...], (TI, TJ, H))
         + c.reshape(TI, TJ, H))
    h = jnp.maximum(h, 0.0).reshape(TI * TJ, H)
    h = jnp.maximum(jnp.dot(h.astype(bf16), w2_ref[...], preferred_element_type=f32)
                    + b2_ref[...], 0.0)

    # final Linear(H -> 1) as a lane reduction so the tile lands lane-dense as (TI, TJ)
    pair = jnp.sum(h.reshape(TI, TJ, H) * w3_ref[...].astype(f32), axis=-1) + b3_ref[...]

    # mean with the two mention scores, then E2ECR's clamp(0, 1)
    o_ref[...] = jnp.clip((mi_ref[...] + mj_ref[...] + pair) / 3.0, 0.0, 1.0)


# ----------------------------- parameter preparation ------------------------------

def prepare_params(params):
    """Zero-pad every Score hidden dim to a multiple of 128 (bit-identical outputs) and
    pre-cast matmul weights to bf16 (biases stay f32 and are added post f32 accumulation)."""
    hid = params["attention"][0].shape[1]
    hp = _round_up(hid, _LANE)

    def pad_c(a):  # pad hidden axis when it is last
        a = jnp.asarray(a, jnp.float32)
        return jnp.pad(a, ((0, 0), (0, hp - a.shape[1])))

    def pad_r(a):  # pad hidden axis when it is first
        a = jnp.asarray(a, jnp.float32)
        return jnp.pad(a, ((0, hp - a.shape[0]), (0, 0)))

    def score(p):
        w1, b1, w2, b2, w3, b3 = p
        return (pad_c(w1).astype(jnp.bfloat16), pad_c(b1),
                pad_r(pad_c(w2)).astype(jnp.bfloat16), pad_c(b2),
                pad_r(w3).astype(jnp.bfloat16), jnp.asarray(b3, jnp.float32))

    w1a, w1b, w1c, b1, w2, b2, w3, b3 = params["pairwise"]
    pairwise = (pad_c(w1a).astype(jnp.bfloat16),
                pad_c(w1b).astype(jnp.bfloat16),
                pad_c(w1c).astype(jnp.bfloat16),
                pad_c(b1),
                pad_r(pad_c(w2)).astype(jnp.bfloat16),
                pad_c(b2),
                pad_r(w3).T.astype(jnp.bfloat16),   # (1, Hp) row for the lane-reduce last layer
                jnp.asarray(b3, jnp.float32))
    return {"attention": score(params["attention"]),
            "mention": score(params["mention"]),
            "pairwise": pairwise}


# ----------------------------- jitted pipeline ------------------------------------

@jax.jit
def _e2ecr_pallas(x, starts, ends, prep):
    B, T, E = x.shape
    S = starts.shape[1]          # padded span count (multiple of the pair tile)
    G = 3 * E
    wa1, ba1, wa2, ba2, wa3, ba3 = prep["attention"]
    wm1, bm1, wm2, bm2, wm3, bm3 = prep["mention"]
    w1a, w1b, w1c, b1, w2, b2, w3r, b3 = prep["pairwise"]
    H = wa1.shape[1]

    def doc(shape):
        n = len(shape)
        return pl.BlockSpec((None,) + shape, lambda b, _n=n: (b,) + (0,) * _n)

    def shared(shape):
        n = len(shape)
        return pl.BlockSpec(shape, lambda b, _n=n: (0,) * _n)

    # ---- fused per-document kernel: attention MLP + span features + mention MLP +
    #      separable pairwise halves ------------------------------------------------
    g, m, pa, pb = pl.pallas_call(
        _mention_kernel,
        out_shape=(jax.ShapeDtypeStruct((B, S, G), jnp.float32),
                   jax.ShapeDtypeStruct((B, S, 1), jnp.float32),
                   jax.ShapeDtypeStruct((B, S, H), jnp.float32),
                   jax.ShapeDtypeStruct((B, S, H), jnp.float32)),
        grid=(B,),
        in_specs=[doc((T, E)), doc((S, 1)), doc((S, 1)),
                  shared((E, H)), shared((1, H)), shared((H, H)), shared((1, H)),
                  shared((H, 1)), shared((1, 1)),
                  shared((G, H)), shared((1, H)), shared((H, H)), shared((1, H)),
                  shared((H, 1)), shared((1, 1)),
                  shared((G, H)), shared((G, H)), shared((1, H))],
        out_specs=(doc((S, G)), doc((S, 1)), doc((S, H)), doc((S, H))),
        compiler_params=pltpu.CompilerParams(
            dimension_semantics=("parallel",),
            vmem_limit_bytes=_VMEM_LIMIT),
    )(x, starts, ends,
      wa1, ba1, wa2, ba2, wa3, ba3,
      wm1, bm1, wm2, bm2, wm3, bm3,
      w1a, w1b, b1)

    # tiny layout plumbing between the two kernels
    g4 = g[:, :, None, :]            # (B, S, 1, G) -> sublane-broadcast source for g_i
    pa4 = pa[:, :, None, :]          # (B, S, 1, H)
    m_row = jnp.swapaxes(m, 1, 2)    # (B, 1, S) lane-dense row for the j broadcast

    TI = TJ = min(_LANE, S)
    ni, nj = S // TI, S // TJ

    # ---- pairwise kernel, tiled over (doc, i_tile, j_tile); weights grid-invariant -
    coref = pl.pallas_call(
        _pairwise_kernel,
        out_shape=jax.ShapeDtypeStruct((B, S, S), jnp.float32),
        grid=(B, ni, nj),
        in_specs=[
            pl.BlockSpec((None, TI, 1, H), lambda b, i, j: (b, i, 0, 0)),   # A_i (+ b1)
            pl.BlockSpec((None, TJ, H), lambda b, i, j: (b, j, 0)),         # B_j
            pl.BlockSpec((None, TI, 1, G), lambda b, i, j: (b, i, 0, 0)),   # g_i
            pl.BlockSpec((None, TJ, G), lambda b, i, j: (b, j, 0)),         # g_j
            pl.BlockSpec((None, TI, 1), lambda b, i, j: (b, i, 0)),         # m_i (column)
            pl.BlockSpec((None, 1, TJ), lambda b, i, j: (b, 0, j)),         # m_j (row)
            pl.BlockSpec((G, H), lambda b, i, j: (0, 0)),                   # w1c
            pl.BlockSpec((H, H), lambda b, i, j: (0, 0)),                   # w2
            pl.BlockSpec((1, H), lambda b, i, j: (0, 0)),                   # b2
            pl.BlockSpec((1, H), lambda b, i, j: (0, 0)),                   # w3 (row)
            pl.BlockSpec((1, 1), lambda b, i, j: (0, 0)),                   # b3
        ],
        out_specs=pl.BlockSpec((None, TI, TJ), lambda b, i, j: (b, i, j)),
        compiler_params=pltpu.CompilerParams(
            dimension_semantics=("parallel", "parallel", "parallel"),
            vmem_limit_bytes=_VMEM_LIMIT),
    )(pa4, pb, g4, g, m, m_row, w1c, w2, b2, w3r, b3)
    return coref


def e2ecr_forward(encoded_docs, spans_ids, params):
    """Full E2ECR forward: (B, T, E) embeddings + spans -> clamped coref scores (B, S, S, 1)."""
    B, T, E = encoded_docs.shape
    S = max(len(doc_spans) for doc_spans in spans_ids)
    s8 = _round_up(max(S, 1), _SUBLANE)
    tile = min(_LANE, s8)
    s_pad = _round_up(s8, tile)

    # tiny host-side glue: span (start, end) index tables; -1 marks padding rows
    starts = np.full((B, s_pad, 1), -1, np.int32)
    ends = np.full((B, s_pad, 1), -1, np.int32)
    for d, doc_spans in enumerate(spans_ids):
        for si, (s, e) in enumerate(doc_spans):
            starts[d, si, 0] = s
            ends[d, si, 0] = e

    prep = prepare_params(params)
    coref = _e2ecr_pallas(encoded_docs.astype(jnp.bfloat16),
                          jnp.asarray(starts), jnp.asarray(ends), prep)
    return coref[:, :S, :S, None]


# ----------------------------- deterministic parameter init -----------------------

def init_score_params(key, d_in, hidden):
    k1, k2, k3, k4, k5, k6 = jax.random.split(key, 6)
    s = 0.05
    return (jax.random.normal(k1, (d_in, hidden), jnp.float32) * s,
            jax.random.normal(k2, (1, hidden), jnp.float32) * s,
            jax.random.normal(k3, (hidden, hidden), jnp.float32) * s,
            jax.random.normal(k4, (1, hidden), jnp.float32) * s,
            jax.random.normal(k5, (hidden, 1), jnp.float32) * s,
            jax.random.normal(k6, (1, 1), jnp.float32) * s)


def init_pairwise_params(key, gi_dim, hidden):
    # Score(gij_dim) with gij_dim = 3 * gi_dim; W1 stored as three gi_dim-sized blocks.
    ka, kb, kc, k1, k2, k3, k4, k5, k6 = jax.random.split(key, 9)
    s = 0.05
    return (jax.random.normal(ka, (gi_dim, hidden), jnp.float32) * s,
            jax.random.normal(kb, (gi_dim, hidden), jnp.float32) * s,
            jax.random.normal(kc, (gi_dim, hidden), jnp.float32) * s,
            jax.random.normal(k1, (1, hidden), jnp.float32) * s,
            jax.random.normal(k2, (hidden, hidden), jnp.float32) * s,
            jax.random.normal(k3, (1, hidden), jnp.float32) * s,
            jax.random.normal(k5, (hidden, 1), jnp.float32) * s,
            jax.random.normal(k6, (1, 1), jnp.float32) * s)


# ----------------------------- pure numpy reference (PyTorch semantics) -----------

def _score_np(x, params):
    w1, b1, w2, b2, w3, b3 = (np.asarray(p, np.float32) for p in params)
    h = np.maximum(x @ w1 + b1, 0.0)
    h = np.maximum(h @ w2 + b2, 0.0)
    return h @ w3 + b3


def reference_forward(encoded_docs, spans_ids, params):
    x = np.asarray(encoded_docs, np.float32)
    B, T, E = x.shape
    S = max(len(doc) for doc in spans_ids)
    attns = _score_np(x.reshape(-1, E), params["attention"]).reshape(B, T, 1)
    g = np.zeros((B, S, 3 * E), np.float32)
    for d, doc_spans in enumerate(spans_ids):
        for si, (s, e) in enumerate(doc_spans):
            ids = list(range(s, e + 1))
            g[d, si] = np.concatenate(
                [x[d, s], x[d, e], np.sum(x[d, ids] * attns[d, ids], axis=0)])
    m = _score_np(g.reshape(-1, 3 * E), params["mention"]).reshape(B, S, 1)
    w1a, w1b, w1c, b1, w2, b2, w3, b3 = params["pairwise"]
    w1 = np.concatenate([np.asarray(w1a), np.asarray(w1b), np.asarray(w1c)], axis=0)
    out = np.zeros((B, S, S, 1), np.float32)
    for d in range(B):
        for i in range(S):
            for j in range(S):
                pe = np.concatenate([g[d, i], g[d, j], g[d, i] * g[d, j]])[None, :]
                ps = _score_np(pe, (w1, b1, w2, b2, w3, b3))[0]
                out[d, i, j] = (m[d, i] + m[d, j] + ps) / 3.0
    return np.clip(out, 0.0, 1.0)


# ----------------------------- main ------------------------------------------------

if __name__ == "__main__":
    B, T, E = 2, 16, 32          # batch, word tokens, embedding dim
    HID = 150                    # Score's default hidden_dim (padded to 256 for the MXU)
    encoded_docs = jax.random.normal(jax.random.PRNGKey(0), (B, T, E), jnp.float32)
    # (start, end) inclusive spans per document (TokenRange equivalents); ragged docs.
    spans_ids = [[(0, 2), (3, 5), (6, 9), (10, 15)],
                 [(1, 4), (5, 5), (8, 12)]]

    ka, km, kp = jax.random.split(jax.random.PRNGKey(1), 3)
    params = {
        "attention": init_score_params(ka, E, HID),        # Score(attn_dim = E)
        "mention":   init_score_params(km, 3 * E, HID),    # Score(gi_dim = 3E)
        "pairwise":  init_pairwise_params(kp, 3 * E, HID), # Score(gij_dim = 9E)
    }

    coref_scores = e2ecr_forward(encoded_docs, spans_ids, params)
    coref_scores = jax.block_until_ready(coref_scores)

    ref = reference_forward(encoded_docs, spans_ids, params)
    assert coref_scores.shape == ref.shape == (B, 4, 4, 1)
    # bf16 matmuls (f32 accumulation) vs. the f32 reference -> slightly looser tolerance
    np.testing.assert_allclose(np.asarray(coref_scores), ref, atol=5e-2, rtol=5e-2)
    print("KERNEL_OK")
</pallas_src>

<mosaic_0001>
module attributes {stable_mosaic.version = 11 : i64} {
  func.func @_mention_kernel(%arg0: i32, %arg1: memref<1x16x32xbf16, #tpu.memory_space<vmem>>, %arg2: memref<1x8x1xi32, #tpu.memory_space<vmem>>, %arg3: memref<1x8x1xi32, #tpu.memory_space<vmem>>, %arg4: memref<32x256xbf16, #tpu.memory_space<vmem>>, %arg5: memref<1x256xf32, #tpu.memory_space<vmem>>, %arg6: memref<256x256xbf16, #tpu.memory_space<vmem>>, %arg7: memref<1x256xf32, #tpu.memory_space<vmem>>, %arg8: memref<256x1xbf16, #tpu.memory_space<vmem>>, %arg9: memref<1x1xf32, #tpu.memory_space<vmem>>, %arg10: memref<96x256xbf16, #tpu.memory_space<vmem>>, %arg11: memref<1x256xf32, #tpu.memory_space<vmem>>, %arg12: memref<256x256xbf16, #tpu.memory_space<vmem>>, %arg13: memref<1x256xf32, #tpu.memory_space<vmem>>, %arg14: memref<256x1xbf16, #tpu.memory_space<vmem>>, %arg15: memref<1x1xf32, #tpu.memory_space<vmem>>, %arg16: memref<96x256xbf16, #tpu.memory_space<vmem>>, %arg17: memref<96x256xbf16, #tpu.memory_space<vmem>>, %arg18: memref<1x256xf32, #tpu.memory_space<vmem>>, %arg19: memref<1x8x96xf32, #tpu.memory_space<vmem>>, %arg20: memref<1x8x1xf32, #tpu.memory_space<vmem>>, %arg21: memref<1x8x256xf32, #tpu.memory_space<vmem>>, %arg22: memref<1x8x256xf32, #tpu.memory_space<vmem>>) attributes {dimension_semantics = [#tpu.dimension_semantics<parallel>], iteration_bounds = array<i64: 2>, scalar_prefetch = 0 : i64, scratch_operands = 0 : i64, tpu.core_type = #tpu.core_type<tc>, window_params = [{transform_indices = @transform_0, window_bounds = array<i64: 1, 16, 32>}, {transform_indices = @transform_1, window_bounds = array<i64: 1, 8, 1>}, {transform_indices = @transform_2, window_bounds = array<i64: 1, 8, 1>}, {pipeline_mode = #tpu.pipeline_mode<synchronous>, transform_indices = @transform_3, window_bounds = array<i64: 32, 256>}, {pipeline_mode = #tpu.pipeline_mode<synchronous>, transform_indices = @transform_4, window_bounds = array<i64: 1, 256>}, {pipeline_mode = #tpu.pipeline_mode<synchronous>, transform_indices = @transform_5, window_bounds = array<i64: 256, 256>}, {pipeline_mode = #tpu.pipeline_mode<synchronous>, transform_indices = @transform_6, window_bounds = array<i64: 1, 256>}, {pipeline_mode = #tpu.pipeline_mode<synchronous>, transform_indices = @transform_7, window_bounds = array<i64: 256, 1>}, {pipeline_mode = #tpu.pipeline_mode<synchronous>, transform_indices = @transform_8, window_bounds = array<i64: 1, 1>}, {pipeline_mode = #tpu.pipeline_mode<synchronous>, transform_indices = @transform_9, window_bounds = array<i64: 96, 256>}, {pipeline_mode = #tpu.pipeline_mode<synchronous>, transform_indices = @transform_10, window_bounds = array<i64: 1, 256>}, {pipeline_mode = #tpu.pipeline_mode<synchronous>, transform_indices = @transform_11, window_bounds = array<i64: 256, 256>}, {pipeline_mode = #tpu.pipeline_mode<synchronous>, transform_indices = @transform_12, window_bounds = array<i64: 1, 256>}, {pipeline_mode = #tpu.pipeline_mode<synchronous>, transform_indices = @transform_13, window_bounds = array<i64: 256, 1>}, {pipeline_mode = #tpu.pipeline_mode<synchronous>, transform_indices = @transform_14, window_bounds = array<i64: 1, 1>}, {pipeline_mode = #tpu.pipeline_mode<synchronous>, transform_indices = @transform_15, window_bounds = array<i64: 96, 256>}, {pipeline_mode = #tpu.pipeline_mode<synchronous>, transform_indices = @transform_16, window_bounds = array<i64: 96, 256>}, {pipeline_mode = #tpu.pipeline_mode<synchronous>, transform_indices = @transform_17, window_bounds = array<i64: 1, 256>}, {transform_indices = @transform_18, window_bounds = array<i64: 1, 8, 96>}, {transform_indices = @transform_19, window_bounds = array<i64: 1, 8, 1>}, {transform_indices = @transform_20, window_bounds = array<i64: 1, 8, 256>}, {transform_indices = @transform_21, window_bounds = array<i64: 1, 8, 256>}]} {
    %c0 = arith.constant 0 : index
    %c0_0 = arith.constant 0 : index
    %c0_1 = arith.constant 0 : index
    %0 = vector.load %arg1[%c0, %c0_0, %c0_1] : memref<1x16x32xbf16, #tpu.memory_space<vmem>>, vector<1x16x32xbf16>
    %1 = vector.shape_cast %0 : vector<1x16x32xbf16> to vector<16x32xbf16>
    %c0_2 = arith.constant 0 : index
    %c0_3 = arith.constant 0 : index
    %2 = vector.load %arg4[%c0_2, %c0_3] : memref<32x256xbf16, #tpu.memory_space<vmem>>, vector<32x256xbf16>
    %cst = arith.constant dense<0.000000e+00> : vector<16x256xf32>
    %3 = tpu.matmul %1, %2, %cst {dimension_numbers = #tpu.dot_dimension_numbers<[1], [0], [0], [1], [0, 0, 1, 1], [], []>} : vector<16x32xbf16>, vector<32x256xbf16>, vector<16x256xf32> -> vector<16x256xf32>
    %c0_4 = arith.constant 0 : index
    %c0_5 = arith.constant 0 : index
    %4 = vector.load %arg5[%c0_4, %c0_5] : memref<1x256xf32, #tpu.memory_space<vmem>>, vector<1x256xf32>
    %5 = vector.broadcast %4 : vector<1x256xf32> to vector<16x256xf32>
    %6 = arith.addf %3, %5 : vector<16x256xf32>
    %cst_6 = arith.constant 0.000000e+00 : f32
    %7 = vector.broadcast %cst_6 : f32 to vector<16x256xf32>
    %8 = arith.maximumf %6, %7 : vector<16x256xf32>
    %9 = arith.truncf %8 : vector<16x256xf32> to vector<16x256xbf16>
    %c0_7 = arith.constant 0 : index
    %c0_8 = arith.constant 0 : index
    %10 = vector.load %arg6[%c0_7, %c0_8] : memref<256x256xbf16, #tpu.memory_space<vmem>>, vector<256x256xbf16>
    %cst_9 = arith.constant dense<0.000000e+00> : vector<16x256xf32>
    %11 = tpu.matmul %9, %10, %cst_9 {dimension_numbers = #tpu.dot_dimension_numbers<[1], [0], [0], [1], [0, 0, 1, 1], [], []>} : vector<16x256xbf16>, vector<256x256xbf16>, vector<16x256xf32> -> vector<16x256xf32>
    %c0_10 = arith.constant 0 : index
    %c0_11 = arith.constant 0 : index
    %12 = vector.load %arg7[%c0_10, %c0_11] : memref<1x256xf32, #tpu.memory_space<vmem>>, vector<1x256xf32>
    %13 = vector.broadcast %12 : vector<1x256xf32> to vector<16x256xf32>
    %14 = arith.addf %11, %13 : vector<16x256xf32>
    %cst_12 = arith.constant 0.000000e+00 : f32
    %15 = vector.broadcast %cst_12 : f32 to vector<16x256xf32>
    %16 = arith.maximumf %14, %15 : vector<16x256xf32>
    %17 = arith.truncf %16 : vector<16x256xf32> to vector<16x256xbf16>
    %c0_13 = arith.constant 0 : index
    %c0_14 = arith.constant 0 : index
    %18 = vector.load %arg8[%c0_13, %c0_14] : memref<256x1xbf16, #tpu.memory_space<vmem>>, vector<256x1xbf16>
    %cst_15 = arith.constant dense<0.000000e+00> : vector<16x1xf32>
    %19 = tpu.matmul %17, %18, %cst_15 {dimension_numbers = #tpu.dot_dimension_numbers<[1], [0], [0], [1], [0, 0, 1, 1], [], []>} : vector<16x256xbf16>, vector<256x1xbf16>, vector<16x1xf32> -> vector<16x1xf32>
    %c0_16 = arith.constant 0 : index
    %c0_17 = arith.constant 0 : index
    %20 = vector.load %arg9[%c0_16, %c0_17] : memref<1x1xf32, #tpu.memory_space<vmem>>, vector<1x1xf32>
    %21 = vector.broadcast %20 : vector<1x1xf32> to vector<16x1xf32>
    %22 = arith.addf %19, %21 : vector<16x1xf32>
    %23 = tpu.iota {dimensions = array<i32: 1>} : vector<8x16xi32>
    %c0_18 = arith.constant 0 : index
    %c0_19 = arith.constant 0 : index
    %c0_20 = arith.constant 0 : index
    %24 = vector.load %arg2[%c0_18, %c0_19, %c0_20] : memref<1x8x1xi32, #tpu.memory_space<vmem>>, vector<1x8x1xi32>
    %25 = vector.shape_cast %24 : vector<1x8x1xi32> to vector<8x1xi32>
    %c0_21 = arith.constant 0 : index
    %c0_22 = arith.constant 0 : index
    %c0_23 = arith.constant 0 : index
    %26 = vector.load %arg3[%c0_21, %c0_22, %c0_23] : memref<1x8x1xi32, #tpu.memory_space<vmem>>, vector<1x8x1xi32>
    %27 = vector.shape_cast %26 : vector<1x8x1xi32> to vector<8x1xi32>
    %28 = vector.broadcast %25 : vector<8x1xi32> to vector<8x16xi32>
    %29 = arith.cmpi eq, %23, %28 : vector<8x16xi32>
    %cst_24 = arith.constant 1.000000e+00 : f32
    %cst_25 = arith.constant 0.000000e+00 : f32
    %30 = vector.broadcast %cst_24 : f32 to vector<8x16xf32>
    %31 = vector.broadcast %cst_25 : f32 to vector<8x16xf32>
    %32 = arith.select %29, %30, %31 : vector<8x16xi1>, vector<8x16xf32>
    %33 = arith.truncf %32 : vector<8x16xf32> to vector<8x16xbf16>
    %34 = vector.broadcast %27 : vector<8x1xi32> to vector<8x16xi32>
    %35 = arith.cmpi eq, %23, %34 : vector<8x16xi32>
    %cst_26 = arith.constant 1.000000e+00 : f32
    %cst_27 = arith.constant 0.000000e+00 : f32
    %36 = vector.broadcast %cst_26 : f32 to vector<8x16xf32>
    %37 = vector.broadcast %cst_27 : f32 to vector<8x16xf32>
    %38 = arith.select %35, %36, %37 : vector<8x16xi1>, vector<8x16xf32>
    %39 = arith.truncf %38 : vector<8x16xf32> to vector<8x16xbf16>
    %40 = vector.broadcast %25 : vector<8x1xi32> to vector<8x16xi32>
    %41 = arith.cmpi sge, %23, %40 : vector<8x16xi32>
    %42 = vector.broadcast %27 : vector<8x1xi32> to vector<8x16xi32>
    %43 = arith.cmpi sle, %23, %42 : vector<8x16xi32>
    %44 = arith.andi %41, %43 : vector<8x16xi1>
    %cst_28 = arith.constant 1.000000e+00 : f32
    %cst_29 = arith.constant 0.000000e+00 : f32
    %45 = vector.broadcast %cst_28 : f32 to vector<8x16xf32>
    %46 = vector.broadcast %cst_29 : f32 to vector<8x16xf32>
    %47 = arith.select %44, %45, %46 : vector<8x16xi1>, vector<8x16xf32>
    %48 = arith.truncf %47 : vector<8x16xf32> to vector<8x16xbf16>
    %49 = arith.extf %1 : vector<16x32xbf16> to vector<16x32xf32>
    %50 = vector.broadcast %22 : vector<16x1xf32> to vector<16x32xf32>
    %51 = arith.mulf %49, %50 : vector<16x32xf32>
    %52 = arith.truncf %51 : vector<16x32xf32> to vector<16x32xbf16>
    %cst_30 = arith.constant dense<0.000000e+00> : vector<8x32xf32>
    %53 = tpu.matmul %33, %1, %cst_30 {dimension_numbers = #tpu.dot_dimension_numbers<[1], [0], [0], [1], [0, 0, 1, 1], [], []>} : vector<8x16xbf16>, vector<16x32xbf16>, vector<8x32xf32> -> vector<8x32xf32>
    %cst_31 = arith.constant dense<0.000000e+00> : vector<8x32xf32>
    %54 = tpu.matmul %39, %1, %cst_31 {dimension_numbers = #tpu.dot_dimension_numbers<[1], [0], [0], [1], [0, 0, 1, 1], [], []>} : vector<8x16xbf16>, vector<16x32xbf16>, vector<8x32xf32> -> vector<8x32xf32>
    %cst_32 = arith.constant dense<0.000000e+00> : vector<8x32xf32>
    %55 = tpu.matmul %48, %52, %cst_32 {dimension_numbers = #tpu.dot_dimension_numbers<[1], [0], [0], [1], [0, 0, 1, 1], [], []>} : vector<8x16xbf16>, vector<16x32xbf16>, vector<8x32xf32> -> vector<8x32xf32>
    %56 = tpu.concatenate %53, %54, %55 in 1 : vector<8x32xf32>, vector<8x32xf32>, vector<8x32xf32> -> vector<8x96xf32>
    %c0_33 = arith.constant 0 : index
    %c0_34 = arith.constant 0 : index
    %c0_35 = arith.constant 0 : index
    %57 = vector.load %arg19[%c0_33, %c0_34, %c0_35] : memref<1x8x96xf32, #tpu.memory_space<vmem>>, vector<1x8x96xf32>
    %58 = vector.shape_cast %57 : vector<1x8x96xf32> to vector<8x96xf32>
    %59 = vector.shape_cast %56 : vector<8x96xf32> to vector<1x8x96xf32>
    tpu.vector_store %arg19[%c0_33, %c0_34, %c0_35], %59 {strides = array<i32>} : memref<1x8x96xf32, #tpu.memory_space<vmem>>, vector<1x8x96xf32>,
    %60 = arith.truncf %56 : vector<8x96xf32> to vector<8x96xbf16>
    %c0_36 = arith.constant 0 : index
    %c0_37 = arith.constant 0 : index
    %61 = vector.load %arg10[%c0_36, %c0_37] : memref<96x256xbf16, #tpu.memory_space<vmem>>, vector<96x256xbf16>
    %cst_38 = arith.constant dense<0.000000e+00> : vector<8x256xf32>
    %62 = tpu.matmul %60, %61, %cst_38 {dimension_numbers = #tpu.dot_dimension_numbers<[1], [0], [0], [1], [0, 0, 1, 1], [], []>} : vector<8x96xbf16>, vector<96x256xbf16>, vector<8x256xf32> -> vector<8x256xf32>
    %c0_39 = arith.constant 0 : index
    %c0_40 = arith.constant 0 : index
    %63 = vector.load %arg11[%c0_39, %c0_40] : memref<1x256xf32, #tpu.memory_space<vmem>>, vector<1x256xf32>
    %64 = vector.broadcast %63 : vector<1x256xf32> to vector<8x256xf32>
    %65 = arith.addf %62, %64 : vector<8x256xf32>
    %cst_41 = arith.constant 0.000000e+00 : f32
    %66 = vector.broadcast %cst_41 : f32 to vector<8x256xf32>
    %67 = arith.maximumf %65, %66 : vector<8x256xf32>
    %68 = arith.truncf %67 : vector<8x256xf32> to vector<8x256xbf16>
    %c0_42 = arith.constant 0 : index
    %c0_43 = arith.constant 0 : index
    %69 = vector.load %arg12[%c0_42, %c0_43] : memref<256x256xbf16, #tpu.memory_space<vmem>>, vector<256x256xbf16>
    %cst_44 = arith.constant dense<0.000000e+00> : vector<8x256xf32>
    %70 = tpu.matmul %68, %69, %cst_44 {dimension_numbers = #tpu.dot_dimension_numbers<[1], [0], [0], [1], [0, 0, 1, 1], [], []>} : vector<8x256xbf16>, vector<256x256xbf16>, vector<8x256xf32> -> vector<8x256xf32>
    %c0_45 = arith.constant 0 : index
    %c0_46 = arith.constant 0 : index
    %71 = vector.load %arg13[%c0_45, %c0_46] : memref<1x256xf32, #tpu.memory_space<vmem>>, vector<1x256xf32>
    %72 = vector.broadcast %71 : vector<1x256xf32> to vector<8x256xf32>
    %73 = arith.addf %70, %72 : vector<8x256xf32>
    %cst_47 = arith.constant 0.000000e+00 : f32
    %74 = vector.broadcast %cst_47 : f32 to vector<8x256xf32>
    %75 = arith.maximumf %73, %74 : vector<8x256xf32>
    %76 = arith.truncf %75 : vector<8x256xf32> to vector<8x256xbf16>
    %c0_48 = arith.constant 0 : index
    %c0_49 = arith.constant 0 : index
    %77 = vector.load %arg14[%c0_48, %c0_49] : memref<256x1xbf16, #tpu.memory_space<vmem>>, vector<256x1xbf16>
    %cst_50 = arith.constant dense<0.000000e+00> : vector<8x1xf32>
    %78 = tpu.matmul %76, %77, %cst_50 {dimension_numbers = #tpu.dot_dimension_numbers<[1], [0], [0], [1], [0, 0, 1, 1], [], []>} : vector<8x256xbf16>, vector<256x1xbf16>, vector<8x1xf32> -> vector<8x1xf32>
    %c0_51 = arith.constant 0 : index
    %c0_52 = arith.constant 0 : index
    %79 = vector.load %arg15[%c0_51, %c0_52] : memref<1x1xf32, #tpu.memory_space<vmem>>, vector<1x1xf32>
    %80 = vector.broadcast %79 : vector<1x1xf32> to vector<8x1xf32>
    %81 = arith.addf %78, %80 : vector<8x1xf32>
    %c0_53 = arith.constant 0 : index
    %c0_54 = arith.constant 0 : index
    %c0_55 = arith.constant 0 : index
    %82 = vector.load %arg20[%c0_53, %c0_54, %c0_55] : memref<1x8x1xf32, #tpu.memory_space<vmem>>, vector<1x8x1xf32>
    %83 = vector.shape_cast %82 : vector<1x8x1xf32> to vector<8x1xf32>
    %84 = vector.shape_cast %81 : vector<8x1xf32> to vector<1x8x1xf32>
    tpu.vector_store %arg20[%c0_53, %c0_54, %c0_55], %84 {strides = array<i32>} : memref<1x8x1xf32, #tpu.memory_space<vmem>>, vector<1x8x1xf32>,
    %c0_56 = arith.constant 0 : index
    %c0_57 = arith.constant 0 : index
    %85 = vector.load %arg16[%c0_56, %c0_57] : memref<96x256xbf16, #tpu.memory_space<vmem>>, vector<96x256xbf16>
    %cst_58 = arith.constant dense<0.000000e+00> : vector<8x256xf32>
    %86 = tpu.matmul %60, %85, %cst_58 {dimension_numbers = #tpu.dot_dimension_numbers<[1], [0], [0], [1], [0, 0, 1, 1], [], []>} : vector<8x96xbf16>, vector<96x256xbf16>, vector<8x256xf32> -> vector<8x256xf32>
    %c0_59 = arith.constant 0 : index
    %c0_60 = arith.constant 0 : index
    %87 = vector.load %arg18[%c0_59, %c0_60] : memref<1x256xf32, #tpu.memory_space<vmem>>, vector<1x256xf32>
    %88 = vector.broadcast %87 : vector<1x256xf32> to vector<8x256xf32>
    %89 = arith.addf %86, %88 : vector<8x256xf32>
    %c0_61 = arith.constant 0 : index
    %c0_62 = arith.constant 0 : index
    %c0_63 = arith.constant 0 : index
    %90 = vector.load %arg21[%c0_61, %c0_62, %c0_63] : memref<1x8x256xf32, #tpu.memory_space<vmem>>, vector<1x8x256xf32>
    %91 = vector.shape_cast %90 : vector<1x8x256xf32> to vector<8x256xf32>
    %92 = vector.shape_cast %89 : vector<8x256xf32> to vector<1x8x256xf32>
    tpu.vector_store %arg21[%c0_61, %c0_62, %c0_63], %92 {strides = array<i32>} : memref<1x8x256xf32, #tpu.memory_space<vmem>>, vector<1x8x256xf32>,
    %c0_64 = arith.constant 0 : index
    %c0_65 = arith.constant 0 : index
    %93 = vector.load %arg17[%c0_64, %c0_65] : memref<96x256xbf16, #tpu.memory_space<vmem>>, vector<96x256xbf16>
    %cst_66 = arith.constant dense<0.000000e+00> : vector<8x256xf32>
    %94 = tpu.matmul %60, %93, %cst_66 {dimension_numbers = #tpu.dot_dimension_numbers<[1], [0], [0], [1], [0, 0, 1, 1], [], []>} : vector<8x96xbf16>, vector<96x256xbf16>, vector<8x256xf32> -> vector<8x256xf32>
    %c0_67 = arith.constant 0 : index
    %c0_68 = arith.constant 0 : index
    %c0_69 = arith.constant 0 : index
    %95 = vector.load %arg22[%c0_67, %c0_68, %c0_69] : memref<1x8x256xf32, #tpu.memory_space<vmem>>, vector<1x8x256xf32>
    %96 = vector.shape_cast %95 : vector<1x8x256xf32> to vector<8x256xf32>
    %97 = vector.shape_cast %94 : vector<8x256xf32> to vector<1x8x256xf32>
    tpu.vector_store %arg22[%c0_67, %c0_68, %c0_69], %97 {strides = array<i32>} : memref<1x8x256xf32, #tpu.memory_space<vmem>>, vector<1x8x256xf32>,
    return
  }
  func.func @transform_0(%arg0: i32) -> (i32, i32, i32) {
    %c0_i32 = arith.constant 0 : i32
    %c0_i32_0 = arith.constant 0 : i32
    %c0_i32_1 = arith.constant 0 : i32
    return %arg0, %c0_i32, %c0_i32_0 : i32, i32, i32
  }
  func.func @transform_1(%arg0: i32) -> (i32, i32, i32) {
    %c0_i32 = arith.constant 0 : i32
    %c0_i32_0 = arith.constant 0 : i32
    %c0_i32_1 = arith.constant 0 : i32
    return %arg0, %c0_i32, %c0_i32_0 : i32, i32, i32
  }
  func.func @transform_2(%arg0: i32) -> (i32, i32, i32) {
    %c0_i32 = arith.constant 0 : i32
    %c0_i32_0 = arith.constant 0 : i32
    %c0_i32_1 = arith.constant 0 : i32
    return %arg0, %c0_i32, %c0_i32_0 : i32, i32, i32
  }
  func.func @transform_3(%arg0: i32) -> (i32, i32) {
    %c0_i32 = arith.constant 0 : i32
    %c0_i32_0 = arith.constant 0 : i32
    %c0_i32_1 = arith.constant 0 : i32
    return %c0_i32, %c0_i32_0 : i32, i32
  }
  func.func @transform_4(%arg0: i32) -> (i32, i32) {
    %c0_i32 = arith.constant 0 : i32
    %c0_i32_0 = arith.constant 0 : i32
    %c0_i32_1 = arith.constant 0 : i32
    return %c0_i32, %c0_i32_0 : i32, i32
  }
  func.func @transform_5(%arg0: i32) -> (i32, i32) {
    %c0_i32 = arith.constant 0 : i32
    %c0_i32_0 = arith.constant 0 : i32
    %c0_i32_1 = arith.constant 0 : i32
    return %c0_i32, %c0_i32_0 : i32, i32
  }
  func.func @transform_6(%arg0: i32) -> (i32, i32) {
    %c0_i32 = arith.constant 0 : i32
    %c0_i32_0 = arith.constant 0 : i32
    %c0_i32_1 = arith.constant 0 : i32
    return %c0_i32, %c0_i32_0 : i32, i32
  }
  func.func @transform_7(%arg0: i32) -> (i32, i32) {
    %c0_i32 = arith.constant 0 : i32
    %c0_i32_0 = arith.constant 0 : i32
    %c0_i32_1 = arith.constant 0 : i32
    return %c0_i32, %c0_i32_0 : i32, i32
  }
  func.func @transform_8(%arg0: i32) -> (i32, i32) {
    %c0_i32 = arith.constant 0 : i32
    %c0_i32_0 = arith.constant 0 : i32
    %c0_i32_1 = arith.constant 0 : i32
    return %c0_i32, %c0_i32_0 : i32, i32
  }
  func.func @transform_9(%arg0: i32) -> (i32, i32) {
    %c0_i32 = arith.constant 0 : i32
    %c0_i32_0 = arith.constant 0 : i32
    %c0_i32_1 = arith.constant 0 : i32
    return %c0_i32, %c0_i32_0 : i32, i32
  }
  func.func @transform_10(%arg0: i32) -> (i32, i32) {
    %c0_i32 = arith.constant 0 : i32
    %c0_i32_0 = arith.constant 0 : i32
    %c0_i32_1 = arith.constant 0 : i32
    return %c0_i32, %c0_i32_0 : i32, i32
  }
  func.func @transform_11(%arg0: i32) -> (i32, i32) {
    %c0_i32 = arith.constant 0 : i32
    %c0_i32_0 = arith.constant 0 : i32
    %c0_i32_1 = arith.constant 0 : i32
    return %c0_i32, %c0_i32_0 : i32, i32
  }
  func.func @transform_12(%arg0: i32) -> (i32, i32) {
    %c0_i32 = arith.constant 0 : i32
    %c0_i32_0 = arith.constant 0 : i32
    %c0_i32_1 = arith.constant 0 : i32
    return %c0_i32, %c0_i32_0 : i32, i32
  }
  func.func @transform_13(%arg0: i32) -> (i32, i32) {
    %c0_i32 = arith.constant 0 : i32
    %c0_i32_0 = arith.constant 0 : i32
    %c0_i32_1 = arith.constant 0 : i32
    return %c0_i32, %c0_i32_0 : i32, i32
  }
  func.func @transform_14(%arg0: i32) -> (i32, i32) {
    %c0_i32 = arith.constant 0 : i32
    %c0_i32_0 = arith.constant 0 : i32
    %c0_i32_1 = arith.constant 0 : i32
    return %c0_i32, %c0_i32_0 : i32, i32
  }
  func.func @transform_15(%arg0: i32) -> (i32, i32) {
    %c0_i32 = arith.constant 0 : i32
    %c0_i32_0 = arith.constant 0 : i32
    %c0_i32_1 = arith.constant 0 : i32
    return %c0_i32, %c0_i32_0 : i32, i32
  }
  func.func @transform_16(%arg0: i32) -> (i32, i32) {
    %c0_i32 = arith.constant 0 : i32
    %c0_i32_0 = arith.constant 0 : i32
    %c0_i32_1 = arith.constant 0 : i32
    return %c0_i32, %c0_i32_0 : i32, i32
  }
  func.func @transform_17(%arg0: i32) -> (i32, i32) {
    %c0_i32 = arith.constant 0 : i32
    %c0_i32_0 = arith.constant 0 : i32
    %c0_i32_1 = arith.constant 0 : i32
    return %c0_i32, %c0_i32_0 : i32, i32
  }
  func.func @transform_18(%arg0: i32) -> (i32, i32, i32) {
    %c0_i32 = arith.constant 0 : i32
    %c0_i32_0 = arith.constant 0 : i32
    %c0_i32_1 = arith.constant 0 : i32
    return %arg0, %c0_i32, %c0_i32_0 : i32, i32, i32
  }
  func.func @transform_19(%arg0: i32) -> (i32, i32, i32) {
    %c0_i32 = arith.constant 0 : i32
    %c0_i32_0 = arith.constant 0 : i32
    %c0_i32_1 = arith.constant 0 : i32
    return %arg0, %c0_i32, %c0_i32_0 : i32, i32, i32
  }
  func.func @transform_20(%arg0: i32) -> (i32, i32, i32) {
    %c0_i32 = arith.constant 0 : i32
    %c0_i32_0 = arith.constant 0 : i32
    %c0_i32_1 = arith.constant 0 : i32
    return %arg0, %c0_i32, %c0_i32_0 : i32, i32, i32
  }
  func.func @transform_21(%arg0: i32) -> (i32, i32, i32) {
    %c0_i32 = arith.constant 0 : i32
    %c0_i32_0 = arith.constant 0 : i32
    %c0_i32_1 = arith.constant 0 : i32
    return %arg0, %c0_i32, %c0_i32_0 : i32, i32, i32
  }
}

module attributes {stable_mosaic.version = 11 : i64} {
  func.func @_pairwise_kernel(%arg0: i32, %arg1: i32, %arg2: i32, %arg3: memref<1x8x1x256xf32, #tpu.memory_space<vmem>>, %arg4: memref<1x8x256xf32, #tpu.memory_space<vmem>>, %arg5: memref<1x8x1x96xf32, #tpu.memory_space<vmem>>, %arg6: memref<1x8x96xf32, #tpu.memory_space<vmem>>, %arg7: memref<1x8x1xf32, #tpu.memory_space<vmem>>, %arg8: memref<1x1x8xf32, #tpu.memory_space<vmem>>, %arg9: memref<96x256xbf16, #tpu.memory_space<vmem>>, %arg10: memref<256x256xbf16, #tpu.memory_space<vmem>>, %arg11: memref<1x256xf32, #tpu.memory_space<vmem>>, %arg12: memref<1x256xbf16, #tpu.memory_space<vmem>>, %arg13: memref<1x1xf32, #tpu.memory_space<vmem>>, %arg14: memref<1x8x8xf32, #tpu.memory_space<vmem>>) attributes {dimension_semantics = [#tpu.dimension_semantics<parallel>, #tpu.dimension_semantics<parallel>, #tpu.dimension_semantics<parallel>], iteration_bounds = array<i64: 2, 1, 1>, scalar_prefetch = 0 : i64, scratch_operands = 0 : i64, tpu.core_type = #tpu.core_type<tc>, window_params = [{transform_indices = @transform_0, window_bounds = array<i64: 1, 8, 1, 256>}, {transform_indices = @transform_1, window_bounds = array<i64: 1, 8, 256>}, {transform_indices = @transform_2, window_bounds = array<i64: 1, 8, 1, 96>}, {transform_indices = @transform_3, window_bounds = array<i64: 1, 8, 96>}, {transform_indices = @transform_4, window_bounds = array<i64: 1, 8, 1>}, {transform_indices = @transform_5, window_bounds = array<i64: 1, 1, 8>}, {pipeline_mode = #tpu.pipeline_mode<synchronous>, transform_indices = @transform_6, window_bounds = array<i64: 96, 256>}, {pipeline_mode = #tpu.pipeline_mode<synchronous>, transform_indices = @transform_7, window_bounds = array<i64: 256, 256>}, {pipeline_mode = #tpu.pipeline_mode<synchronous>, transform_indices = @transform_8, window_bounds = array<i64: 1, 256>}, {pipeline_mode = #tpu.pipeline_mode<synchronous>, transform_indices = @transform_9, window_bounds = array<i64: 1, 256>}, {pipeline_mode = #tpu.pipeline_mode<synchronous>, transform_indices = @transform_10, window_bounds = array<i64: 1, 1>}, {transform_indices = @transform_11, window_bounds = array<i64: 1, 8, 8>}]} {
    %c0 = arith.constant 0 : index
    %c0_0 = arith.constant 0 : index
    %c0_1 = arith.constant 0 : index
    %c0_2 = arith.constant 0 : index
    %0 = vector.load %arg5[%c0, %c0_0, %c0_1, %c0_2] : memref<1x8x1x96xf32, #tpu.memory_space<vmem>>, vector<1x8x1x96xf32>
    %1 = vector.shape_cast %0 : vector<1x8x1x96xf32> to vector<8x1x96xf32>
    %2 = vector.shape_cast %1 : vector<8x1x96xf32> to vector<8x1x96xf32>
    %3 = vector.broadcast %2 : vector<8x1x96xf32> to vector<8x8x96xf32>
    %c0_3 = arith.constant 0 : index
    %c0_4 = arith.constant 0 : index
    %c0_5 = arith.constant 0 : index
    %4 = vector.load %arg6[%c0_3, %c0_4, %c0_5] : memref<1x8x96xf32, #tpu.memory_space<vmem>>, vector<1x8x96xf32>
    %5 = vector.shape_cast %4 : vector<1x8x96xf32> to vector<8x96xf32>
    %6 = vector.shape_cast %5 : vector<8x96xf32> to vector<1x8x96xf32>
    %7 = vector.broadcast %6 : vector<1x8x96xf32> to vector<8x8x96xf32>
    %8 = arith.mulf %3, %7 : vector<8x8x96xf32>
    %9 = vector.shape_cast %8 : vector<8x8x96xf32> to vector<64x96xf32>
    %10 = arith.truncf %9 : vector<64x96xf32> to vector<64x96xbf16>
    %c0_6 = arith.constant 0 : index
    %c0_7 = arith.constant 0 : index
    %11 = vector.load %arg9[%c0_6, %c0_7] : memref<96x256xbf16, #tpu.memory_space<vmem>>, vector<96x256xbf16>
    %cst = arith.constant dense<0.000000e+00> : vector<64x256xf32>
    %12 = tpu.matmul %10, %11, %cst {dimension_numbers = #tpu.dot_dimension_numbers<[1], [0], [0], [1], [0, 0, 1, 1], [], []>} : vector<64x96xbf16>, vector<96x256xbf16>, vector<64x256xf32> -> vector<64x256xf32>
    %c0_8 = arith.constant 0 : index
    %c0_9 = arith.constant 0 : index
    %c0_10 = arith.constant 0 : index
    %c0_11 = arith.constant 0 : index
    %13 = vector.load %arg3[%c0_8, %c0_9, %c0_10, %c0_11] : memref<1x8x1x256xf32, #tpu.memory_space<vmem>>, vector<1x8x1x256xf32>
    %14 = vector.shape_cast %13 : vector<1x8x1x256xf32> to vector<8x1x256xf32>
    %15 = vector.shape_cast %14 : vector<8x1x256xf32> to vector<8x1x256xf32>
    %16 = vector.broadcast %15 : vector<8x1x256xf32> to vector<8x8x256xf32>
    %c0_12 = arith.constant 0 : index
    %c0_13 = arith.constant 0 : index
    %c0_14 = arith.constant 0 : index
    %17 = vector.load %arg4[%c0_12, %c0_13, %c0_14] : memref<1x8x256xf32, #tpu.memory_space<vmem>>, vector<1x8x256xf32>
    %18 = vector.shape_cast %17 : vector<1x8x256xf32> to vector<8x256xf32>
    %19 = vector.shape_cast %18 : vector<8x256xf32> to vector<1x8x256xf32>
    %20 = vector.broadcast %19 : vector<1x8x256xf32> to vector<8x8x256xf32>
    %21 = arith.addf %16, %20 : vector<8x8x256xf32>
    %22 = vector.shape_cast %12 : vector<64x256xf32> to vector<8x8x256xf32>
    %23 = arith.addf %21, %22 : vector<8x8x256xf32>
    %cst_15 = arith.constant 0.000000e+00 : f32
    %24 = vector.broadcast %cst_15 : f32 to vector<8x8x256xf32>
    %25 = arith.maximumf %23, %24 : vector<8x8x256xf32>
    %26 = vector.shape_cast %25 : vector<8x8x256xf32> to vector<64x256xf32>
    %27 = arith.truncf %26 : vector<64x256xf32> to vector<64x256xbf16>
    %c0_16 = arith.constant 0 : index
    %c0_17 = arith.constant 0 : index
    %28 = vector.load %arg10[%c0_16, %c0_17] : memref<256x256xbf16, #tpu.memory_space<vmem>>, vector<256x256xbf16>
    %cst_18 = arith.constant dense<0.000000e+00> : vector<64x256xf32>
    %29 = tpu.matmul %27, %28, %cst_18 {dimension_numbers = #tpu.dot_dimension_numbers<[1], [0], [0], [1], [0, 0, 1, 1], [], []>} : vector<64x256xbf16>, vector<256x256xbf16>, vector<64x256xf32> -> vector<64x256xf32>
    %c0_19 = arith.constant 0 : index
    %c0_20 = arith.constant 0 : index
    %30 = vector.load %arg11[%c0_19, %c0_20] : memref<1x256xf32, #tpu.memory_space<vmem>>, vector<1x256xf32>
    %31 = vector.broadcast %30 : vector<1x256xf32> to vector<64x256xf32>
    %32 = arith.addf %29, %31 : vector<64x256xf32>
    %cst_21 = arith.constant 0.000000e+00 : f32
    %33 = vector.broadcast %cst_21 : f32 to vector<64x256xf32>
    %34 = arith.maximumf %32, %33 : vector<64x256xf32>
    %35 = vector.shape_cast %34 : vector<64x256xf32> to vector<8x8x256xf32>
    %c0_22 = arith.constant 0 : index
    %c0_23 = arith.constant 0 : index
    %36 = vector.load %arg12[%c0_22, %c0_23] : memref<1x256xbf16, #tpu.memory_space<vmem>>, vector<1x256xbf16>
    %37 = arith.extf %36 : vector<1x256xbf16> to vector<1x256xf32>
    %38 = vector.shape_cast %37 : vector<1x256xf32> to vector<1x1x256xf32>
    %39 = vector.broadcast %38 : vector<1x1x256xf32> to vector<8x8x256xf32>
    %40 = arith.mulf %35, %39 : vector<8x8x256xf32>
    %cst_24 = arith.constant dense<0.000000e+00> : vector<8x8xf32>
    %41 = vector.multi_reduction <add>, %40, %cst_24 [2] : vector<8x8x256xf32> to vector<8x8xf32>
    %c0_25 = arith.constant 0 : index
    %c0_26 = arith.constant 0 : index
    %42 = vector.load %arg13[%c0_25, %c0_26] : memref<1x1xf32, #tpu.memory_space<vmem>>, vector<1x1xf32>
    %43 = vector.broadcast %42 : vector<1x1xf32> to vector<8x8xf32>
    %44 = arith.addf %41, %43 : vector<8x8xf32>
    %c0_27 = arith.constant 0 : index
    %c0_28 = arith.constant 0 : index
    %c0_29 = arith.constant 0 : index
    %45 = vector.load %arg7[%c0_27, %c0_28, %c0_29] : memref<1x8x1xf32, #tpu.memory_space<vmem>>, vector<1x8x1xf32>
    %46 = vector.shape_cast %45 : vector<1x8x1xf32> to vector<8x1xf32>
    %c0_30 = arith.constant 0 : index
    %c0_31 = arith.constant 0 : index
    %c0_32 = arith.constant 0 : index
    %47 = vector.load %arg8[%c0_30, %c0_31, %c0_32] : memref<1x1x8xf32, #tpu.memory_space<vmem>>, vector<1x1x8xf32>
    %48 = vector.shape_cast %47 : vector<1x1x8xf32> to vector<1x8xf32>
    %49 = vector.broadcast %46 : vector<8x1xf32> to vector<8x8xf32>
    %50 = vector.broadcast %48 : vector<1x8xf32> to vector<8x8xf32>
    %51 = arith.addf %49, %50 : vector<8x8xf32>
    %52 = arith.addf %51, %44 : vector<8x8xf32>
    %cst_33 = arith.constant 3.000000e+00 : f32
    %53 = vector.broadcast %cst_33 : f32 to vector<8x8xf32>
    %54 = arith.divf %52, %53 : vector<8x8xf32>
    %cst_34 = arith.constant 0.000000e+00 : f32
    %cst_35 = arith.constant 1.000000e+00 : f32
    %55 = vector.broadcast %cst_34 : f32 to vector<8x8xf32>
    %56 = arith.maximumf %55, %54 : vector<8x8xf32>
    %57 = vector.broadcast %cst_35 : f32 to vector<8x8xf32>
    %58 = arith.minimumf %57, %56 : vector<8x8xf32>
    %c0_36 = arith.constant 0 : index
    %c0_37 = arith.constant 0 : index
    %c0_38 = arith.constant 0 : index
    %59 = vector.load %arg14[%c0_36, %c0_37, %c0_38] : memref<1x8x8xf32, #tpu.memory_space<vmem>>, vector<1x8x8xf32>
    %60 = vector.shape_cast %59 : vector<1x8x8xf32> to vector<8x8xf32>
    %61 = vector.shape_cast %58 : vector<8x8xf32> to vector<1x8x8xf32>
    tpu.vector_store %arg14[%c0_36, %c0_37, %c0_38], %61 {strides = array<i32>} : memref<1x8x8xf32, #tpu.memory_space<vmem>>, vector<1x8x8xf32>,
    return
  }
  func.func @transform_0(%arg0: i32, %arg1: i32, %arg2: i32) -> (i32, i32, i32, i32) {
    %c0_i32 = arith.constant 0 : i32
    %c0_i32_0 = arith.constant 0 : i32
    %c0_i32_1 = arith.constant 0 : i32
    return %arg0, %arg1, %c0_i32, %c0_i32_0 : i32, i32, i32, i32
  }
  func.func @transform_1(%arg0: i32, %arg1: i32, %arg2: i32) -> (i32, i32, i32) {
    %c0_i32 = arith.constant 0 : i32
    %c0_i32_0 = arith.constant 0 : i32
    return %arg0, %arg2, %c0_i32 : i32, i32, i32
  }
  func.func @transform_2(%arg0: i32, %arg1: i32, %arg2: i32) -> (i32, i32, i32, i32) {
    %c0_i32 = arith.constant 0 : i32
    %c0_i32_0 = arith.constant 0 : i32
    %c0_i32_1 = arith.constant 0 : i32
    return %arg0, %arg1, %c0_i32, %c0_i32_0 : i32, i32, i32, i32
  }
  func.func @transform_3(%arg0: i32, %arg1: i32, %arg2: i32) -> (i32, i32, i32) {
    %c0_i32 = arith.constant 0 : i32
    %c0_i32_0 = arith.constant 0 : i32
    return %arg0, %arg2, %c0_i32 : i32, i32, i32
  }
  func.func @transform_4(%arg0: i32, %arg1: i32, %arg2: i32) -> (i32, i32, i32) {
    %c0_i32 = arith.constant 0 : i32
    %c0_i32_0 = arith.constant 0 : i32
    return %arg0, %arg1, %c0_i32 : i32, i32, i32
  }
  func.func @transform_5(%arg0: i32, %arg1: i32, %arg2: i32) -> (i32, i32, i32) {
    %c0_i32 = arith.constant 0 : i32
    %c0_i32_0 = arith.constant 0 : i32
    return %arg0, %c0_i32, %arg2 : i32, i32, i32
  }
  func.func @transform_6(%arg0: i32, %arg1: i32, %arg2: i32) -> (i32, i32) {
    %c0_i32 = arith.constant 0 : i32
    %c0_i32_0 = arith.constant 0 : i32
    %c0_i32_1 = arith.constant 0 : i32
    return %c0_i32, %c0_i32_0 : i32, i32
  }
  func.func @transform_7(%arg0: i32, %arg1: i32, %arg2: i32) -> (i32, i32) {
    %c0_i32 = arith.constant 0 : i32
    %c0_i32_0 = arith.constant 0 : i32
    %c0_i32_1 = arith.constant 0 : i32
    return %c0_i32, %c0_i32_0 : i32, i32
  }
  func.func @transform_8(%arg0: i32, %arg1: i32, %arg2: i32) -> (i32, i32) {
    %c0_i32 = arith.constant 0 : i32
    %c0_i32_0 = arith.constant 0 : i32
    %c0_i32_1 = arith.constant 0 : i32
    return %c0_i32, %c0_i32_0 : i32, i32
  }
  func.func @transform_9(%arg0: i32, %arg1: i32, %arg2: i32) -> (i32, i32) {
    %c0_i32 = arith.constant 0 : i32
    %c0_i32_0 = arith.constant 0 : i32
    %c0_i32_1 = arith.constant 0 : i32
    return %c0_i32, %c0_i32_0 : i32, i32
  }
  func.func @transform_10(%arg0: i32, %arg1: i32, %arg2: i32) -> (i32, i32) {
    %c0_i32 = arith.constant 0 : i32
    %c0_i32_0 = arith.constant 0 : i32
    %c0_i32_1 = arith.constant 0 : i32
    return %c0_i32, %c0_i32_0 : i32, i32
  }
  func.func @transform_11(%arg0: i32, %arg1: i32, %arg2: i32) -> (i32, i32, i32) {
    %c0_i32 = arith.constant 0 : i32
    return %arg0, %arg1, %arg2 : i32, i32, i32
  }
}

</mosaic_0001>

<bundles_post_ra>
// kernel: _e2ecr_pallas.3
= control target key start
LH: loop header
LB: loop body
LE: loop exit
PB: predicated region body
PF: predicated region fallthrough
CT: control target
= control target key end

     0   :  { %s2320_s0 = inlined_call_operand.vmem [shape: f32[2,8,1,256], index: 0, kind: input, shape index: {}]   ;;  %s2321_s1 = inlined_call_operand.vmem [shape: f32[2,8,256], index: 1, kind: input, shape index: {}]   ;;  %s2322_s2 = inlined_call_operand.vmem [shape: f32[2,8,1,96], index: 2, kind: input, shape index: {}, may-alias: {2,3}]   ;;  %s2323_s3 = inlined_call_operand.vmem [shape: f32[2,8,96], index: 3, kind: input, shape index: {}, may-alias: {2,3}]   ;;  %s2324_s4 = inlined_call_operand.vmem [shape: f32[2,8,1], index: 4, kind: input, shape index: {}]   ;;  %s2325_s5 = inlined_call_operand.vmem [shape: f32[2,1,8], index: 5, kind: input, shape index: {}]   ;;  %s2326_s6 = inlined_call_operand.vmem [shape: bf16[96,256], index: 6, kind: input, shape index: {}]   ;;  %s2327_s7 = inlined_call_operand.vmem [shape: bf16[256,256], index: 7, kind: input, shape index: {}]   ;;  %s2328_s8 = inlined_call_operand.vmem [shape: f32[1,256], index: 8, kind: input, shape index: {}]   ;;  %s2329_s9 = inlined_call_operand.vmem [shape: bf16[1,256], index: 9, kind: input, shape index: {}]   ;;  %s2330_s10 = inlined_call_operand.<no memory space> [shape: f32[1,1], index: 10, kind: input, shape index: {}]   ;;  %s2331_s11 = inlined_call_operand.hbm [shape: f32[2,8,8], index: 11, kind: output, shape index: {}]  }
   0x1   :  { %v16_v0 = vstv %s2330_s10 }
   0x2   :  { %17 = vst [vmem:[#allocation2] sm:$0x1] %v16_v0 }
   0x3   :  { %18 = vsyncpa [#allocation4], 0 }
   0x4   :  { %20 = vsyncpa [#allocation4 + $0x1], 0  ;;  %s1922_s19 = smov 0   ;;  %s1924_s20 = smov 0  }
   0x5   :  { %s1926_s21 = smov 0   ;;  %s1928_s22 = smov 0  }
   0x6   :  { %s1930_s23 = smov 0   ;;  %s1932_s24 = smov 0  }
   0x7 LB: > { %2335 = sst [smem:[#allocation6_spill]] %s1843_s21  ;;  %s1578_s10 = sadd.s32 4294967295, %s1855_s24   ;;  %s1855_s24 = sphi %s1932_s24, %s26_s24   ;;  %s1851_s23 = sphi %s1930_s23, %s2344_s23   ;;  %s1847_s22 = sphi %s1928_s22, %s2343_s22   ;;  %s1843_s21 = sphi %s1926_s21, %s2342_s21   ;;  %s1839_s20 = sphi %s1924_s20, %s2346_s20   ;;  %s1835_s19 = sphi %s1922_s19, %s2345_s19  }
   0x8   : > { %2336 = sst [smem:[#allocation7_spill]] %s1851_s23  ;;  %s1579_s25 = sadd.s32 4294967294, %s1855_s24  }
   0x9   : > { %s45_s26 = sadd.s32 1, %s1851_s23  ;;  %s329_s27 = sadd.s32 1, %s1843_s21 }
   0xa   : > { %p47_p0 = scmp.ge.s32.totalorder %s45_s26, 2  ;;  %p339_p1 = scmp.ne.s32.totalorder %s1843_s21, %s1839_s20 }
   0xb   : > { %p340_p2 = scmp.eq.s32.totalorder %s1578_s10, 1  ;;  %p345_p3 = scmp.ne.s32.totalorder %s1839_s20, %s1835_s19 }
   0xc   : > { %s2348_s26 = smov (%p47_p0, %s45_s26), 0  ;;  %p346_p5 = scmp.eq.s32.totalorder %s1579_s25, 1 }
   0xd   : > { %2337 = sst [smem:[#allocation8_spill]] %s2348_s26  ;;  %p1962_p4 = por %p340_p2, %p339_p1 }
   0xe   : > { %s322_s29 = ssub.s32 %s1851_s23, %s2348_s26  ;;  %p1582_p6 = scmp.ge.s32.totalorder %s1855_s24, 1 }
   0xf   : > { %p327_p7 = scmp.eq.s32.totalorder %s322_s29, 0  ;;  %p1969_p8 = por %p346_p5, %p345_p3 }
  0x10   : > { %p445_p9 = scmp.lt.s32.totalorder %s1855_s24, 3 }
  0x11   : > { %s1975_s12 = scalar_select %p327_p7, %s1843_s21, %s329_s27  }
  0x12   : > { %p446_p10 = pnand %p1582_p6, %p445_p9 }
  0x13   : > { %2340 = sst [smem:[#allocation9_spill]] %s1975_s12  ;;  %v1711_v1 = vld [vmem:[%s2326_s6 + $0x4] ss:$8 sps:$4 sm:$0xff] (!%p446_p10)   ;;  %p527_p11 = scmp.lt.s32.totalorder (!%p446_p10), %s1847_s22, 1  ;;  %v1713_v2 = vld [vmem:[%s2326_s6] ss:$8 sps:$4 sm:$0xff] (!%p446_p10)  }
  0x14   : > { %449 = sbr.rel (%p446_p10) target bundleno = 695 (0x2b7), region = 64  ;;  %v1857_v3 = vmov (!%p446_p10), 0   ;;  %729 = vmatprep.subr.bf16.mxu0 (!%p446_p10), %v1711_v1  ;;  %v1714_v4 = vld [vmem:[%s2326_s6 + $0x14] ss:$8 sps:$4 sm:$0xff] (!%p446_p10)   ;;  %v1716_v5 = vld [vmem:[%s2326_s6 + $0x10] ss:$8 sps:$4 sm:$0xff] (!%p446_p10)  }
  0x15   : > { %761 = vmatprep.mubr.bf16.mxu0 (!%p446_p10), %v1857_v3  ;;  %1709 = vset.pattern.permute.xlu0 (!%p446_p10), %v1857_v3  ;;  %v1717_v6 = vld [vmem:[%s2326_s6 + $0x24] ss:$8 sps:$4 sm:$0xff] (!%p446_p10)   ;;  %v1719_v7 = vld [vmem:[%s2326_s6 + $0x20] ss:$8 sps:$4 sm:$0xff] (!%p446_p10)   ;;  %v1720_v8 = vld [vmem:[%s2326_s6 + $0x34] ss:$8 sps:$4 sm:$0xff] (!%p446_p10)  }
  0x16   : > { %1710 = vset.pattern.permute.xlu1 (!%p446_p10), %v1857_v3  ;;  %730 = vmatpush1.bf16.msra.mxu0 (!%p446_p10), %v1713_v2  ;;  %v1722_v9 = vld [vmem:[%s2326_s6 + $0x30] ss:$8 sps:$4 sm:$0xff] (!%p446_p10)   ;;  %v1723_v10 = vld [vmem:[%s2326_s6 + $0x44] ss:$8 sps:$4 sm:$0xff] (!%p446_p10)   ;;  %v1731_v12 = vld [vmem:[%s2327_s7] ss:$8 sps:$4 sm:$0xff] (!%p446_p10)  }
  0x17   : > { %731 = vmatprep.subr.bf16.mxu0 (!%p446_p10), %v1714_v4  ;;  %v1729_v11 = vld [vmem:[%s2327_s7 + $0x4] ss:$8 sps:$4 sm:$0xff] (!%p446_p10)   ;;  %v1725_v13 = vld [vmem:[%s2326_s6 + $0x40] ss:$8 sps:$4 sm:$0xff] (!%p446_p10)   ;;  %v1732_v16 = vld [vmem:[%s2327_s7 + $0x14] ss:$8 sps:$4 sm:$0xff] (!%p446_p10)  }
  0x18   : > { %1160 = vmatprep.subr.bf16.mxu1 (!%p446_p10), %v1729_v11  ;;  %v1734_v18 = vld [vmem:[%s2327_s7 + $0x10] ss:$8 sps:$4 sm:$0xff] (!%p446_p10)   ;;  %v1735_v19 = vld [vmem:[%s2327_s7 + $0x24] ss:$8 sps:$4 sm:$0xff] (!%p446_p10)   ;;  %v1726_v20 = vld [vmem:[%s2326_s6 + $0x54] ss:$8 sps:$4 sm:$0xff] (!%p446_p10)  }
  0x19   : > { %1161 = vmatpush1.bf16.msra.mxu1 (!%p446_p10), %v1731_v12  ;;  %v1728_v21 = vld [vmem:[%s2326_s6 + $0x50] ss:$8 sps:$4 sm:$0xff] (!%p446_p10)   ;;  %v1737_v24 = vld [vmem:[%s2327_s7 + $0x20] ss:$8 sps:$4 sm:$0xff] (!%p446_p10)   ;;  %v1738_v25 = vld [vmem:[%s2327_s7 + $0x34] ss:$8 sps:$4 sm:$0xff] (!%p446_p10)  }
  0x1a   : > { %732 = vmatpush1.bf16.msra.mxu0 (!%p446_p10), %v1716_v5  ;;  %1162 = vmatprep.subr.bf16.mxu1 (!%p446_p10), %v1732_v16  ;;  %v1740_v29 = vld [vmem:[%s2327_s7 + $0x30] ss:$8 sps:$4 sm:$0xff] (!%p446_p10)   ;;  %vm716_vm0 = vcmask (!%p446_p10), 785408   ;;  %v1741_v30 = vld [vmem:[%s2327_s7 + $0x44] ss:$8 sps:$4 sm:$0xff] (!%p446_p10)   ;;  %vm1384_vm1 = vcmask (!%p446_p10), 1041409  }
  0x1b   : > { %s1994_s27 = scalar_select %p527_p11, %s1847_s22, 1  ;;  %733 = vmatprep.subr.bf16.mxu0 %v1717_v6  ;;  %v1743_v33 = vld [vmem:[%s2327_s7 + $0x40] ss:$8 sps:$4 sm:$0xff]   ;;  %v1744_v34 = vld [vmem:[%s2327_s7 + $0x54] ss:$8 sps:$4 sm:$0xff]   ;;  %vm1386_vm2 = vcmask 1042434  }
  0x1c   : > { %v1746_v36 = vld [vmem:[%s2327_s7 + $0x50] ss:$8 sps:$4 sm:$0xff]   ;;  %v1747_v39 = vld [vmem:[%s2327_s7 + $0x64] ss:$8 sps:$4 sm:$0xff]   ;;  %v1749_v42 = vld [vmem:[%s2327_s7 + $0x60] ss:$8 sps:$4 sm:$0xff]  }
  0x1d   : > { %s2003_s16 = sshll.u32 %s1994_s27, 3  ;;  %1163 = vmatpush1.bf16.msra.mxu1 %v1734_v18  ;;  %v1750_v43 = vld [vmem:[%s2327_s7 + $0x74] ss:$8 sps:$4 sm:$0xff]   ;;  %v1752_v45 = vld [vmem:[%s2327_s7 + $0x70] ss:$8 sps:$4 sm:$0xff]   ;;  %s1584_s10 = sshll.u32 %s1994_s27, 4 }
  0x1e   : > { %s2018_s15 = scalar_lea.vmem %s2322_s2, %s2003_s16  ;;  %734 = vmatpush1.bf16.msra.mxu0 %v1719_v7  ;;  %s560_s17 = scalar_lea.vmem %s2323_s3, %s2003_s16  ;;  %1164 = vmatprep.subr.bf16.mxu1 %v1735_v19  ;;  %v1753_v48 = vld [vmem:[%s2327_s7 + $0x84] ss:$8 sps:$4 sm:$0xff]   ;;  %v1755_v51 = vld [vmem:[%s2327_s7 + $0x80] ss:$8 sps:$4 sm:$0xff]   ;;  %v1756_v52 = vld [vmem:[%s2327_s7 + $0x94] ss:$8 sps:$4 sm:$0xff]  }
  0x1f   : > { %735 = vmatprep.subr.bf16.mxu0 %v1720_v8  ;;  %v1590_v14 = vld [vmem:[%s2018_s15] ss:$0 sm:$0xff]  ;;  %v1591_v15 = vld [vmem:[%s2018_s15 + $0x1] ss:$0 sm:$0xff]  ;;  %v1592_v26 = vld [vmem:[%s2018_s15 + $0x2] ss:$0 sm:$0xff]  ;;  %s544_s14 = scalar_lea.vmem %s2321_s1, %s1584_s10  ;;  %s567_s25 = scalar_lea.vmem %s2324_s4, %s2003_s16 }
  0x20   : > { %v631_v17 = vld [vmem:[%s560_s17] sm:$0xff]  ;;  %v1758_v54 = vld [vmem:[%s2327_s7 + $0x90] ss:$8 sps:$4 sm:$0xff]   ;;  %v1762_v57 = vld [vmem:[%s2327_s7 + $0xb4] ss:$8 sps:$4 sm:$0xff]   ;;  %s2151_s17 = scalar_lea.vmem %s2320_s0, %s1584_s10  ;;  %vm1388_vm3 = vcmask 1043459  }
  0x21   : > { %v632_v22 = vmul.f32 %v1590_v14, %v631_v17  ;;  %v633_v23 = vmul.f32 %v1591_v15, %v631_v17  ;;  %v1593_v28 = vld [vmem:[%s2018_s15 + $0x3] ss:$0 sm:$0xff]  ;;  %1165 = vmatpush1.bf16.msra.mxu1 %v1737_v24  ;;  %v634_v31 = vmul.f32 %v1592_v26, %v631_v17  ;;  %v1594_v37 = vld [vmem:[%s2018_s15 + $0x4] ss:$0 sm:$0xff]  ;;  %v1595_v38 = vld [vmem:[%s2018_s15 + $0x5] ss:$0 sm:$0xff] }
  0x22   : > { %736 = vmatpush1.bf16.msra.mxu0 %v1722_v9  ;;  %1166 = vmatprep.subr.bf16.mxu1 %v1738_v25  ;;  %v635_v32 = vmul.f32 %v1593_v28, %v631_v17  ;;  %v636_v40 = vmul.f32 %v1594_v37, %v631_v17  ;;  %v637_v41 = vmul.f32 %v1595_v38, %v631_v17  ;;  %v1596_v46 = vld [vmem:[%s2018_s15 + $0x6] ss:$0 sm:$0xff]  ;;  %v1597_v47 = vld [vmem:[%s2018_s15 + $0x7] ss:$0 sm:$0xff]  ;;  %v1761_v56 = vld [vmem:[%s2327_s7 + $0xa0] ss:$8 sps:$4 sm:$0xff]  }
  0x23   : > { %737 = vmatprep.subr.bf16.mxu0 %v1723_v10  ;;  %v640_v27 = vpack.c.bf16 %v633_v23, %v632_v22  ;;  %v638_v49 = vmul.f32 %v1596_v46, %v631_v17  ;;  %v639_v50 = vmul.f32 %v1597_v47, %v631_v17  ;;  %v1759_v55 = vld [vmem:[%s2327_s7 + $0xa4] ss:$8 sps:$4 sm:$0xff]   ;;  %v1764_v58 = vld [vmem:[%s2327_s7 + $0xb0] ss:$8 sps:$4 sm:$0xff]   ;;  %v1767_v60 = vld [vmem:[%s2327_s7 + $0xc0] ss:$8 sps:$4 sm:$0xff]  }
  0x24   : > { %v641_v35 = vpack.c.bf16 %v635_v32, %v634_v31  ;;  %v642_v44 = vpack.c.bf16 %v637_v41, %v636_v40  ;;  %v1765_v59 = vld [vmem:[%s2327_s7 + $0xc4] ss:$8 sps:$4 sm:$0xff]   ;;  %v1768_v61 = vld [vmem:[%s2327_s7 + $0xd4] ss:$8 sps:$4 sm:$0xff]   ;;  %v1770_v62 = vld [vmem:[%s2327_s7 + $0xd0] ss:$8 sps:$4 sm:$0xff]  }
  0x25   : > { %1167 = vmatpush1.bf16.msra.mxu1 %v1740_v29  ;;  %v643_v53 = vpack.c.bf16 %v639_v50, %v638_v49  ;;  %v1771_v63 = vld [vmem:[%s2327_s7 + $0xe4] ss:$8 sps:$4 sm:$0xff]   ;;  %v1773_v0 = vld [vmem:[%s2327_s7 + $0xe0] ss:$8 sps:$4 sm:$0xff]   ;;  %v1774_v1 = vld [vmem:[%s2327_s7 + $0xf4] ss:$8 sps:$4 sm:$0xff]  }
  0x26   : > { %738 = vmatpush1.bf16.msra.mxu0 %v1725_v13  ;;  %1168 = vmatprep.subr.bf16.mxu1 %v1741_v30  ;;  %v1776_v2 = vld [vmem:[%s2327_s7 + $0xf0] ss:$8 sps:$4 sm:$0xff]   ;;  %v802_v6 = vld [vmem:[%s2151_s17] sm:$0x3]  ;;  %v803_v8 = vld [vmem:[%s2151_s17 + $0x2] sm:$0x3] }
  0x27   : > { %739 = vmatprep.subr.bf16.mxu0 %v1726_v20  ;;  %v2165_v10 = vld [vmem:[%s544_s14] sm:$0xff]  ;;  %v2168_v12 = vld [vmem:[%s544_s14 + $0x8] sm:$0xff]  ;;  %vm1390_vm4 = vcmask 1044484   ;;  %vm1392_vm5 = vcmask 1045509   ;;  %vm1394_vm6 = vcmask 1046534   ;;  %vm1396_vm7 = vcmask 1047559  }
  0x28   : > { %v804_v17 = vld [vmem:[%s2151_s17 + $0x4] sm:$0x3]  ;;  %s1649_s13 = sshll.u32 %s1847_s22, 7  ;;  %vm1404_vm8 = vcmask 64512   ;;  %s1858_s22 = smov [#allocation3]  }
  0x29   : > { %1169 = vmatpush1.bf16.msra.mxu1 %v1743_v33  ;;  %s2273_s15 = scalar_lea.hbm %s2331_s11, %s1649_s13 }
  0x2a   : > { %740 = vmatpush1.bf16.msra.mxu0 %v1728_v21  ;;  %1170 = vmatprep.subr.bf16.mxu1 %v1744_v34  ;;  %v805_v21 = vld [vmem:[%s2151_s17 + $0x6] sm:$0x3] }
  0x2d   : > { %1610 = vmatmul.mubr.msk.bf16.vlgmr.msra.gmra.mrb[0].mxu0 %vm716_vm0, %v640_v27  ;;  %1171 = vmatpush1.bf16.msra.mxu1 %v1746_v36 }
  0x2e   : > { %771 = vmatprep.mubr.bf16.mxu0 %v1857_v3  ;;  %1172 = vmatprep.subr.bf16.mxu1 %v1747_v39  ;;  %v806_v39 = vld [vmem:[%s2151_s17 + $0x8] sm:$0x3] }
  0x31   : > { %1173 = vmatpush1.bf16.msra.mxu1 %v1749_v42 }
  0x32   : > { %1174 = vmatprep.subr.bf16.mxu1 %v1750_v43 }
  0x35   : > { %1611 = vmatmul.mubr.msk.bf16.gmra.mrb[4].mxu0 %vm716_vm0, %v641_v35  ;;  %1175 = vmatpush1.bf16.msra.mxu1 %v1752_v45  ;;  %v807_v45 = vld [vmem:[%s2151_s17 + $0xa] sm:$0x3] }
  0x36   : > { %781 = vmatprep.mubr.bf16.mxu0 %v1857_v3  ;;  %1176 = vmatprep.subr.bf16.mxu1 %v1753_v48 }
  0x39   : > { %1177 = vmatpush1.bf16.msra.mxu1 %v1755_v51 }
  0x3a   : > { %1178 = vmatprep.subr.bf16.mxu1 %v1756_v52 }
  0x3d   : > { %1612 = vmatmul.mubr.msk.bf16.gmra.mrb[8].mxu0 %vm716_vm0, %v642_v44  ;;  %1179 = vmatpush1.bf16.msra.mxu1 %v1758_v54 }
  0x3e   : > { %791 = vmatprep.mubr.bf16.mxu0 %v1857_v3  ;;  %1180 = vmatprep.subr.bf16.mxu1 %v1759_v55  ;;  %v818_v3 = vlaneseq }
  0x40   : > { %v2146_v4 = vshrl.u32 %v818_v3, 7 }
  0x41   : > { %1181 = vmatpush1.bf16.msra.mxu1 %v1761_v56 }
  0x42   : > { %1182 = vmatprep.subr.bf16.mxu1 %v1762_v57  ;;  %v2154_v5 = vsub.s32 0, %v2146_v4  ;;  %v2158_v7 = vsub.s32 1, %v2146_v4 }
  0x44   : > { %v821_v9 = vrot.slane %v802_v6, %v2154_v5  ;;  %v825_v11 = vrot.slane %v802_v6, %v2158_v7  ;;  %v829_v13 = vrot.slane %v803_v8, %v2154_v5  ;;  %v833_v14 = vrot.slane %v803_v8, %v2158_v7 }
  0x45   : > { %1613 = vmatmul.mubr.msk.bf16.gmra.mrb[12].mxu0 %vm716_vm0, %v643_v53  ;;  %1183 = vmatpush1.bf16.msra.mxu1 %v1764_v58  ;;  %v837_v24 = vrot.slane %v804_v17, %v2154_v5  ;;  %v841_v27 = vrot.slane %v804_v17, %v2158_v7  ;;  %v845_v30 = vrot.slane %v805_v21, %v2154_v5 }
  0x46   : > { %1184 = vmatprep.subr.bf16.mxu1 %v1765_v59  ;;  %v900_v15 = vadd.f32 %v2165_v10, %v821_v9  ;;  %v901_v16 = vadd.f32 %v2168_v12, %v825_v11  ;;  %v902_v18 = vadd.f32 %v2165_v10, %v829_v13  ;;  %v903_v20 = vadd.f32 %v2168_v12, %v833_v14  ;;  %v809_v9 = vld [vmem:[%s2151_s17 + $0xe] sm:$0x3] }
  0x47   : > { %v849_v32 = vrot.slane %v805_v21, %v2158_v7  ;;  %v904_v35 = vadd.f32 %v2165_v10, %v837_v24  ;;  %v905_v38 = vadd.f32 %v2168_v12, %v841_v27  ;;  %v906_v41 = vadd.f32 %v2165_v10, %v845_v30 }
  0x48   : > { %v853_v48 = vrot.slane %v806_v39, %v2154_v5  ;;  %v857_v51 = vrot.slane %v806_v39, %v2158_v7  ;;  %v861_v54 = vrot.slane %v807_v45, %v2154_v5  ;;  %v865_v56 = vrot.slane %v807_v45, %v2158_v7 }
  0x49   : > { %1185 = vmatpush1.bf16.msra.mxu1 %v1767_v60  ;;  %v907_v44 = vadd.f32 %v2168_v12, %v849_v32 }
  0x4a   : > { %1186 = vmatprep.subr.bf16.mxu1 %v1768_v61  ;;  %v908_v59 = vadd.f32 %v2165_v10, %v853_v48  ;;  %v911_v8 = vadd.f32 %v2168_v12, %v865_v56  ;;  %v1258_v48 = vsub.s32 2, %v2146_v4 }
  0x4d   : > { %1187 = vmatpush1.bf16.msra.mxu1 %v1770_v62  ;;  %v909_v62 = vadd.f32 %v2168_v12, %v857_v51 }
  0x4e   : > { %1188 = vmatprep.subr.bf16.mxu1 %v1771_v63  ;;  %v808_v63 = vld [vmem:[%s2151_s17 + $0xc] sm:$0x3]  ;;  %s573_s17 = scalar_lea.vmem %s2325_s5, %s1994_s27  ;;  %s523_s27 = sand.u32 1, %s1839_s20  }
  0x4f   : > { %v869_v14 = vrot.slane %v808_v63, %v2154_v5  ;;  %v873_v17 = vrot.slane %v808_v63, %v2158_v7  ;;  %s1583_s26 = sshll.u32 %s523_s27, 3  ;;  %s1407_s18 = scalar_lea.sflag [#allocation4], %s523_s27 }
  0x50   : > { %s525_s14 = scalar_lea.vmem [#allocation3], %s1583_s26 }
  0x51   : > { %1189 = vmatpush1.bf16.msra.mxu1 %v1773_v0  ;;  %s1422_s21 = sshll.u32 %s525_s14, 4  ;;  %s2275_s21 = int_to_ptr.vmem [resolvable:$true] %s1422_s21 }
  0x52   : > { %1190 = vmatprep.subr.bf16.mxu1 %v1774_v1  ;;  %v910_v1 = vadd.f32 %v2165_v10, %v861_v54  ;;  %s1777_s10 = scalar_lea.vmem %s2275_s21, 128 }
  0x53   : > { %p1778_p12 = scmp.ne.s32.totalorder %s2275_s21, %s1777_s10 }
  0x55   : > { %1191 = vmatpush1.bf16.msra.mxu1 %v1776_v2  ;;  %p1779_p13 = pnand %p1778_p12, %p1962_p4 }
  0x57   : > { %p1780_p0 = pneg %p1779_p13 }
 0x100   : > { %v763_v19 = vpop.f32.mrb[0].mxu0 }
 0x101   : > { %v916_v22 = vadd.f32 %v900_v15, %v763_v19  ;;  %v765_v23 = vpop.f32.mrb[1].mxu0 }
 0x102   : > { %v917_v25 = vadd.f32 %v901_v16, %v765_v23  ;;  %v767_v26 = vpop.f32.mrb[2].mxu0 }
 0x103   : > { %v918_v28 = vadd.f32 %v902_v18, %v767_v26  ;;  %v769_v29 = vpop.f32.mrb[3].mxu0  ;;  %v932_v33 = vmax.f32 %v916_v22, 0.0  ;;  %v881_v22 = vrot.slane %v809_v9, %v2158_v7 }
 0x104   : > { %v919_v31 = vadd.f32 %v903_v20, %v769_v29  ;;  %v933_v36 = vmax.f32 %v917_v25, 0.0  ;;  %v877_v20 = vrot.slane %v809_v9, %v2154_v5  ;;  %v912_v25 = vadd.f32 %v2165_v10, %v869_v14 }
 0x105   : > { %v934_v34 = vmax.f32 %v918_v28, 0.0  ;;  %v913_v28 = vadd.f32 %v2168_v12, %v873_v17 }
 0x106   : > { %v935_v37 = vmax.f32 %v919_v31, 0.0  ;;  %v914_v30 = vadd.f32 %v2165_v10, %v877_v20  ;;  %v1249_v10 = vld [vmem:[%s2329_s9] sm:$0x3] }
 0x107   : > { %v948_v40 = vpack.c.bf16 %v934_v34, %v932_v33  ;;  %v915_v33 = vadd.f32 %v2168_v12, %v881_v22  ;;  %v1250_v12 = vunpack.c.l.bf16 %v1249_v10 }
 0x108   : > { %v773_v42 = vpop.f32.mrb[4].mxu0  ;;  %v949_v43 = vpack.c.bf16 %v935_v37, %v933_v36 }
 0x109   : > { %v920_v46 = vadd.f32 %v904_v35, %v773_v42  ;;  %v775_v47 = vpop.f32.mrb[5].mxu0 }
 0x10a   : > { %v921_v49 = vadd.f32 %v905_v38, %v775_v47  ;;  %v777_v50 = vpop.f32.mrb[6].mxu0  ;;  %1192 = vmatprep.mubr.bf16.mxu1 %v949_v43  ;;  %v988_v47 = vld [vmem:[%s2328_s8] sm:$0x3] }
 0x10b   : > { %v922_v52 = vadd.f32 %v906_v41, %v777_v50  ;;  %v779_v53 = vpop.f32.mrb[7].mxu0  ;;  %1193 = vmatmul.mubr.bf16.vlgmr.msra.gmra.mrb[0].mxu1 %v948_v40  ;;  %v936_v57 = vmax.f32 %v920_v46, 0.0  ;;  %v1255_v50 = vrot.slane %v1250_v12, %v2154_v5  ;;  %v2218_v51 = vrot.slane %v988_v47, %v2158_v7 }
 0x10c   : > { %v923_v55 = vadd.f32 %v907_v44, %v779_v53  ;;  %v937_v60 = vmax.f32 %v921_v49, 0.0  ;;  %v2214_v49 = vrot.slane %v988_v47, %v2154_v5 }
 0x10d   : > { %v938_v58 = vmax.f32 %v922_v52, 0.0  ;;  %v1259_v52 = vrot.slane %v1250_v12, %v1258_v48  ;;  %v2222_v56 = vrot.slane %v1255_v50, %v2154_v5 }
 0x10e   : > { %v939_v61 = vmax.f32 %v923_v55, 0.0 }
 0x10f   : > { %v950_v0 = vpack.c.bf16 %v938_v58, %v936_v57 }
 0x110   : > { %v951_v2 = vpack.c.bf16 %v939_v61, %v937_v60  ;;  %v783_v6 = vpop.f32.mrb[8].mxu0 }
 0x111   : > { %v924_v11 = vadd.f32 %v908_v59, %v783_v6  ;;  %v785_v13 = vpop.f32.mrb[9].mxu0  ;;  %v2226_v59 = vrot.slane %v1259_v52, %v2154_v5 }
 0x112   : > { %v925_v15 = vadd.f32 %v909_v62, %v785_v13  ;;  %v787_v16 = vpop.f32.mrb[10].mxu0  ;;  %1202 = vmatprep.mubr.bf16.mxu1 %v951_v2 }
 0x113   : > { %v926_v18 = vadd.f32 %v910_v1, %v787_v16  ;;  %v789_v19 = vpop.f32.mrb[11].mxu0  ;;  %1203 = vmatmul.mubr.bf16.gmra.mrb[4].mxu1 %v950_v0  ;;  %v940_v23 = vmax.f32 %v924_v11, 0.0 }
 0x114   : > { %v927_v21 = vadd.f32 %v911_v8, %v789_v19  ;;  %v941_v26 = vmax.f32 %v925_v15, 0.0 }
 0x115   : > { %v942_v24 = vmax.f32 %v926_v18, 0.0 }
 0x116   : > { %v943_v27 = vmax.f32 %v927_v21, 0.0 }
 0x117   : > { %v952_v29 = vpack.c.bf16 %v942_v24, %v940_v23 }
 0x118   : > { %v953_v31 = vpack.c.bf16 %v943_v27, %v941_v26  ;;  %v793_v32 = vpop.f32.mrb[12].mxu0 }
 0x119   : > { %v928_v34 = vadd.f32 %v912_v25, %v793_v32  ;;  %v795_v35 = vpop.f32.mrb[13].mxu0 }
 0x11a   : > { %v929_v36 = vadd.f32 %v913_v28, %v795_v35  ;;  %v797_v37 = vpop.f32.mrb[14].mxu0  ;;  %1212 = vmatprep.mubr.bf16.mxu1 %v953_v31 }
 0x11b   : > { %v930_v38 = vadd.f32 %v914_v30, %v797_v37  ;;  %v799_v39 = vpop.f32.mrb[15].mxu0  ;;  %1213 = vmatmul.mubr.bf16.gmra.mrb[8].mxu1 %v952_v29  ;;  %v944_v41 = vmax.f32 %v928_v34, 0.0 }
 0x11c   : > { %v931_v40 = vadd.f32 %v915_v33, %v799_v39  ;;  %v945_v43 = vmax.f32 %v929_v36, 0.0 }
 0x11d   : > { %v946_v42 = vmax.f32 %v930_v38, 0.0 }
 0x11e   : > { %v947_v44 = vmax.f32 %v931_v40, 0.0 }
 0x11f   : > { %v954_v45 = vpack.c.bf16 %v946_v42, %v944_v41 }
 0x120   : > { %v955_v46 = vpack.c.bf16 %v947_v44, %v945_v43 }
 0x122   : > { %1222 = vmatprep.mubr.bf16.mxu1 %v955_v46 }
 0x123   : > { %1223 = vmatmul.mubr.bf16.gmra.mrb[12].mxu1 %v954_v45 }
 0x1de   : > { %v1194_v53 = vpop.f32.mrb[0].mxu1 }
 0x1df   : > { %v1195_v54 = vadd.f32 %v1194_v53, %v2214_v49  ;;  %v1196_v55 = vpop.f32.mrb[1].mxu1 }
 0x1e0   : > { %v1197_v57 = vadd.f32 %v1196_v55, %v2218_v51  ;;  %v1198_v58 = vpop.f32.mrb[2].mxu1 }
 0x1e1   : > { %v1233_v60 = vmax.f32 %v1195_v54, 0.0  ;;  %v1199_v61 = vadd.f32 %v1198_v58, %v2214_v49  ;;  %v1200_v62 = vpop.f32.mrb[3].mxu1 }
 0x1e2   : > { %v1234_v7 = vmax.f32 %v1197_v57, 0.0  ;;  %v1201_v63 = vadd.f32 %v1200_v62, %v2218_v51 }
 0x1e3   : > { %v1235_v0 = vmax.f32 %v1199_v61, 0.0  ;;  %v1270_v1 = vmul.f32 %v2222_v56, %v1233_v60 }
 0x1e4   : > { %v1236_v2 = vmax.f32 %v1201_v63, 0.0  ;;  %v1271_v6 = vmul.f32 %v2226_v59, %v1234_v7 }
 0x1e5   : > { %v1272_v8 = vmul.f32 %v2222_v56, %v1235_v0 }
 0x1e6   : > { %v1273_v9 = vmul.f32 %v2226_v59, %v1236_v2  ;;  %v1204_v11 = vpop.f32.mrb[4].mxu1  ;;  %v1286_v5 = vadd.f32 %v1271_v6, %v1270_v1 }
 0x1e7   : > { %v1205_v13 = vadd.f32 %v1204_v11, %v2214_v49  ;;  %v1206_v14 = vpop.f32.mrb[5].mxu1 }
 0x1e8   : > { %v1207_v15 = vadd.f32 %v1206_v14, %v2218_v51  ;;  %v1208_v16 = vpop.f32.mrb[6].mxu1  ;;  %1287 = vadd.xlane.f32.xlu0 %v1286_v5  ;;  %v1289_v17 = vadd.f32 %v1273_v9, %v1272_v8 }
 0x1e9   : > { %v1237_v18 = vmax.f32 %v1205_v13, 0.0  ;;  %v1209_v19 = vadd.f32 %v1208_v16, %v2214_v49  ;;  %v1210_v20 = vpop.f32.mrb[7].mxu1 }
 0x1ea   : > { %v1238_v21 = vmax.f32 %v1207_v15, 0.0  ;;  %v1211_v22 = vadd.f32 %v1210_v20, %v2218_v51 }
 0x1eb   : > { %v1239_v23 = vmax.f32 %v1209_v19, 0.0  ;;  %v1274_v24 = vmul.f32 %v2222_v56, %v1237_v18 }
 0x1ec   : > { %v1240_v25 = vmax.f32 %v1211_v22, 0.0  ;;  %1290 = vadd.xlane.f32.xlu0 %v1289_v17  ;;  %v1275_v26 = vmul.f32 %v2226_v59, %v1238_v21 }
 0x1ed   : > { %v1276_v27 = vmul.f32 %v2222_v56, %v1239_v23 }
 0x1ee   : > { %v1277_v28 = vmul.f32 %v2226_v59, %v1240_v25  ;;  %v1214_v29 = vpop.f32.mrb[8].mxu1  ;;  %v1292_v30 = vadd.f32 %v1275_v26, %v1274_v24  ;;  %v1647_v26 = vld [vmem:[%s573_s17] ss:$0 sm:$0xff] }
 0x1ef   : > { %v1215_v31 = vadd.f32 %v1214_v29, %v2214_v49  ;;  %v1216_v32 = vpop.f32.mrb[9].mxu1 }
 0x1f0   : > { %v1217_v33 = vadd.f32 %v1216_v32, %v2218_v51  ;;  %v1218_v34 = vpop.f32.mrb[10].mxu1  ;;  %1293 = vadd.xlane.f32.xlu1 %v1292_v30  ;;  %v1295_v35 = vadd.f32 %v1277_v28, %v1276_v27 }
 0x1f1   : > { %v1241_v36 = vmax.f32 %v1215_v31, 0.0  ;;  %v1219_v37 = vadd.f32 %v1218_v34, %v2214_v49  ;;  %v1220_v38 = vpop.f32.mrb[11].mxu1 }
 0x1f2   : > { %v1242_v39 = vmax.f32 %v1217_v33, 0.0  ;;  %v1221_v40 = vadd.f32 %v1220_v38, %v2218_v51 }
 0x1f3   : > { %v1278_v41 = vmul.f32 %v2222_v56, %v1241_v36  ;;  %v1243_v42 = vmax.f32 %v1219_v37, 0.0 }
 0x1f4   : > { %v1279_v43 = vmul.f32 %v2226_v59, %v1242_v39  ;;  %v1244_v44 = vmax.f32 %v1221_v40, 0.0  ;;  %1296 = vadd.xlane.f32.xlu1 %v1295_v35 }
 0x1f5   : > { %v1280_v45 = vmul.f32 %v2222_v56, %v1243_v42 }
 0x1f6   : > { %v1281_v46 = vmul.f32 %v2226_v59, %v1244_v44  ;;  %v1224_v10 = vpop.f32.mrb[12].mxu1  ;;  %v1298_v12 = vadd.f32 %v1279_v43, %v1278_v41 }
 0x1f7   : > { %v1225_v47 = vadd.f32 %v1224_v10, %v2214_v49  ;;  %v1226_v48 = vpop.f32.mrb[13].mxu1 }
 0x1f8   : > { %v1227_v50 = vadd.f32 %v1226_v48, %v2218_v51  ;;  %v1228_v52 = vpop.f32.mrb[14].mxu1  ;;  %1299 = vadd.xlane.f32.xlu0 %v1298_v12  ;;  %v1301_v53 = vadd.f32 %v1281_v46, %v1280_v45 }
 0x1f9   : > { %v1245_v54 = vmax.f32 %v1225_v47, 0.0  ;;  %v1229_v55 = vadd.f32 %v1228_v52, %v2214_v49  ;;  %v1230_v57 = vpop.f32.mrb[15].mxu1  ;;  %v1328_v49 = vld [vmem:[%s567_s25] sm:$0xff]  ;;  %s1781_s25 = sshll.u32 %s1858_s22, 4  ;;  %s1782_s25 = int_to_ptr.vmem [resolvable:$false] %s1781_s25 }
 0x1fa   : > { %v1246_v58 = vmax.f32 %v1227_v50, 0.0  ;;  %v1231_v60 = vadd.f32 %v1230_v57, %v2218_v51  ;;  %1302 = vadd.xlane.f32.xlu1 %v1301_v53  ;;  %v1646_v51 = vld [vmem:[#allocation2] ss:$0 sm:$0xff]  ;;  %s1783_s16 = scalar_lea.vmem %s1782_s25, 256  ;;  %p1784_p1 = scmp.lt.s32.totalorder %s2275_s21, %s1782_s25 }
 0x1fb   : > { %v1282_v61 = vmul.f32 %v2222_v56, %v1245_v54  ;;  %v1247_v62 = vmax.f32 %v1229_v55, 0.0  ;;  %p1785_p2 = scmp.lt.s32.totalorder %s1783_s16, %s1777_s10 }
 0x1fc   : > { %v1283_v7 = vmul.f32 %v2226_v59, %v1246_v58  ;;  %v1248_v63 = vmax.f32 %v1231_v60, 0.0 }
 0x1fd   : > { %v1284_v0 = vmul.f32 %v2222_v56, %v1247_v62  ;;  %p1786_p3 = por %p1785_p2, %p1784_p1 }
 0x1fe   : > { %v1285_v1 = vmul.f32 %v2226_v59, %v1248_v63  ;;  %v1304_v2 = vadd.f32 %v1283_v7, %v1282_v61  ;;  %v1351_v59 = vand.u32 127, %v818_v3 }
 0x1ff   : > { %p1787_p5 = pnand %p1786_p3, %p1780_p0 }
 0x200   : > { %1305 = vadd.xlane.f32.xlu0 %v1304_v2  ;;  %v1307_v6 = vadd.f32 %v1285_v1, %v1284_v0  ;;  %v1354_v15 = vsub.s32 %v1351_v59, %v2146_v4 }
 0x202   : > { %1308 = vadd.xlane.f32.xlu1 %v1307_v6 }
 0x213   : > { %1332 = vperm.xlu1 %1710, %v1328_v49  }
 0x216   : > { %1317 = vperm.xlu0 %1709, %v1646_v51  }
 0x275   : > { %v1288_v8 = vpop.xlane.xlu0 %1287 }
 0x279   : > { %v1291_v11 = vpop.xlane.xlu0 %1290 }
 0x27d   : > { %v1294_v9 = vpop.xlane.xlu1 %1293 }
 0x281   : > { %v1297_v56 = vpop.xlane.xlu1 %1296 }
 0x285   : > { %v1300_v5 = vpop.xlane.xlu0 %1299 }
 0x287   : > { %v1303_v14 = vpop.xlane.xlu1 %1302 }
 0x28d   : > { %v1306_v13 = vpop.xlane.xlu0 %1305 }
 0x28f   : > { %v1309_v17 = vpop.xlane.xlu1 %1308 }
 0x293   : > { %v1333_v27 = vpop.permute.xlu1 %1332 }
 0x294   : > { %v1341_v35 = vadd.f32 %v1647_v26, %v1333_v27 }
 0x295   : > { %v1318_v16 = vpop.permute.xlu0 %1317 }
 0x296   : > { %v1320_v18 = vadd.f32 %v1318_v16, %v1288_v8  ;;  %v1321_v19 = vadd.f32 %v1318_v16, %v1291_v11  ;;  %v1322_v20 = vadd.f32 %v1318_v16, %v1294_v9  ;;  %v1323_v21 = vadd.f32 %v1318_v16, %v1297_v56 }
 0x297   : > { %v1324_v22 = vadd.f32 %v1318_v16, %v1300_v5  ;;  %v1325_v25 = vadd.f32 %v1318_v16, %v1303_v14  ;;  %v1326_v4 = vadd.f32 %v1318_v16, %v1306_v13  ;;  %v1327_v28 = vadd.f32 %v1318_v16, %v1309_v17 }
 0x298   : > { %v1355_v23 = vrot.slane %v1320_v18, %v1354_v15  ;;  %v1359_v3 = vrot.slane %v1321_v19, %v1354_v15  ;;  %v1363_v24 = vrot.slane %v1322_v20, %v1354_v15  ;;  %v1367_v29 = vrot.slane %v1323_v21, %v1354_v15 }
 0x299   : > { %v1371_v31 = vrot.slane %v1324_v22, %v1354_v15  ;;  %v1375_v33 = vrot.slane %v1325_v25, %v1354_v15  ;;  %v1379_v36 = vrot.slane %v1326_v4, %v1354_v15  ;;  %v1383_v38 = vrot.slane %v1327_v28, %v1354_v15 }
 0x29a   : > { %v1385_v30 = vsel %vm1384_vm1, %v1359_v3, %v1355_v23 }
 0x29b   : > { %v1387_v32 = vsel %vm1386_vm2, %v1363_v24, %v1385_v30 }
 0x29c   : > { %v1389_v34 = vsel %vm1388_vm3, %v1367_v29, %v1387_v32 }
 0x29d   : > { %v1391_v37 = vsel %vm1390_vm4, %v1371_v31, %v1389_v34 }
 0x29e   : > { %v1393_v39 = vsel %vm1392_vm5, %v1375_v33, %v1391_v37 }
 0x29f   : > { %v1395_v40 = vsel %vm1394_vm6, %v1379_v36, %v1393_v39 }
 0x2a0   : > { %v1397_v41 = vsel %vm1396_vm7, %v1383_v38, %v1395_v40 }
 0x2a1   : > { %v1399_v42 = vadd.f32 %v1397_v41, %v1341_v35 }
 0x2a3   : > { %v1401_v43 = vmul.f32 0.33333334, %v1399_v42 }
 0x2a5   : > { %v1402_v44 = vmax.f32 %v1401_v43, 0.0 }
 0x2a7   : > { %v1403_v45 = vmin.f32 %v1402_v44, 1.0 }
 0x2a9   : > { %1405 = vst.msk [vmem:[%s525_s14] sm:$0xff] %vm1404_vm8, %v1403_v45 }
 0x2aa   : > { %1790 = shalt.err (!%p1787_p5)
}
 0x2ab   : > { %s1791_s29 = scalar_lea.hbm %s2273_s15, 128  ;;  %s1795_s26 = scalar_lea.hbm %s2331_s11, 256 }
 0x2ac   : > { %p1792_p6 = scmp.ne.s32.totalorder %s2273_s15, %s1791_s29  ;;  %p1796_p10 = scmp.lt.u32.totalorder %s2273_s15, %s2331_s11 }
 0x2ad   : > { %p1797_p11 = scmp.lt.u32.totalorder %s1795_s26, %s1791_s29  ;;  %p1799_p13 = scmp.lt.u32.totalorder %s1791_s29, %s2273_s15 }
 0x2ae   : > { %p1793_p7 = pnand %p1792_p6, %p1962_p4 }
 0x2af   : > { %p1798_p12 = por %p1797_p11, %p1796_p10 }
 0x2b0   : > { %p1794_p9 = pneg %p1793_p7 }
 0x2b1   : > { %p1800_p0 = por %p1799_p13, %p1798_p12 }
 0x2b3   : > { %p1801_p1 = pnand %p1800_p0, %p1794_p9 }
 0x2b5   : > { %1804 = shalt.err (!%p1801_p1)
}
 0x2b6   : > { %1653 = dma.vmem_to_hbm [thread:$0]  (%p1962_p4), %s2275_s21, 128, %s2273_s15, %s1407_s18  }
 0x2b7 PF: > { %p1659_p2 = scmp.ge.s32.totalorder %s1855_s24, 2  ;;  %s1434_s23 = sand.u32 1, %s1835_s19  }
 0x2b8   : > { %s1435_s12 = scalar_lea.sflag [#allocation4], %s1434_s23 }
 0x2b9   : > { %p1656_p3 = pnand %p1659_p2, %p1969_p8 }
 0x2bb   : > { %1830 = dma.done.wait (!%p1656_p3), %s1435_s12, 128  }
 0x2bc   : > { %1832 = vsyncadd (!%p1656_p3), %s1435_s12, 4294967168  ;;  %s26_s24 = sadd.s32 1, %s1855_s24   ;;  %s2341_s10 = sld [smem:[#allocation6_spill]] }
 0x2bd   : > { %p23_p5 = scmp.ge.s32.totalorder %s26_s24, 4   ;;  %s2342_s21 = sld [smem:[#allocation9_spill]] }
 0x2be   : > { %s2343_s22 = sld [smem:[#allocation7_spill]]  ;;  %s2344_s23 = sld [smem:[#allocation8_spill]] }
 0x2bf   : > { %s2345_s19 = smov %s1839_s20  ;;  %25 = sbr.rel (!%p23_p5) target bundleno = 7 (0x7), region = 114 }
 0x2c2   : > { %s2346_s20 = smov %s2341_s10 }
 0x2c6   :  { %1440 = vsyncpa [#allocation4], 1 }
 0x2c7   :  { %1442 = vsyncpa [#allocation4 + $0x1], 1 }

// kernel: _e2ecr_pallas.2
= control target key start
LH: loop header
LB: loop body
LE: loop exit
PB: predicated region body
PF: predicated region fallthrough
CT: control target
= control target key end

     0   :  { %s4191_s0 = inlined_call_operand.hbm [shape: bf16[2,16,32], index: 0, kind: input, shape index: {}]   ;;  %s4192_s1 = inlined_call_operand.vmem [shape: s32[2,8,1], index: 1, kind: input, shape index: {}]   ;;  %s4193_s2 = inlined_call_operand.vmem [shape: s32[2,8,1], index: 2, kind: input, shape index: {}]   ;;  %s4194_s3 = inlined_call_operand.hbm [shape: bf16[32,256], index: 3, kind: input, shape index: {}]   ;;  %s4195_s4 = inlined_call_operand.vmem [shape: f32[1,256], index: 4, kind: input, shape index: {}]   ;;  %s4196_s5 = inlined_call_operand.vmem [shape: bf16[256,256], index: 5, kind: input, shape index: {}]   ;;  %s4197_s6 = inlined_call_operand.vmem [shape: f32[1,256], index: 6, kind: input, shape index: {}]   ;;  %s4198_s7 = inlined_call_operand.vmem [shape: bf16[256,1], index: 7, kind: input, shape index: {}]   ;;  %s4199_s8 = inlined_call_operand.<no memory space> [shape: f32[1,1], index: 8, kind: input, shape index: {}]   ;;  %s4200_s9 = inlined_call_operand.vmem [shape: bf16[96,256], index: 9, kind: input, shape index: {}]   ;;  %s4201_s10 = inlined_call_operand.hbm [shape: f32[1,256], index: 10, kind: input, shape index: {}]   ;;  %s4202_s11 = inlined_call_operand.hbm [shape: bf16[256,256], index: 11, kind: input, shape index: {}]   ;;  %s4203_s12 = inlined_call_operand.hbm [shape: f32[1,256], index: 12, kind: input, shape index: {}]   ;;  %s4204_s13 = inlined_call_operand.vmem [shape: bf16[256,1], index: 13, kind: input, shape index: {}]   ;;  %s4205_s15 = inlined_call_operand.hbm [shape: bf16[96,256], index: 15, kind: input, shape index: {}]   ;;  %s4206_s16 = inlined_call_operand.hbm [shape: bf16[96,256], index: 16, kind: input, shape index: {}]   ;;  %s4207_s17 = inlined_call_operand.hbm [shape: f32[1,256], index: 17, kind: input, shape index: {}]   ;;  %s4208_s18 = inlined_call_operand.vmem [shape: f32[2,8,96], index: 18, kind: output, shape index: {0}]   ;;  %s4209_s19 = inlined_call_operand.vmem [shape: f32[2,8,1], index: 19, kind: output, shape index: {1}]   ;;  %s4210_s20 = inlined_call_operand.vmem [shape: f32[2,8,256], index: 20, kind: output, shape index: {2}]   ;;  %s4211_s21 = inlined_call_operand.vmem [shape: f32[2,8,256], index: 21, kind: output, shape index: {3}]   ;;  %s4212_s14 = inlined_call_operand.<no memory space> [shape: f32[1,1], index: 14, kind: input, shape index: {}]  }
   0x1   :  { %4220 = sst [smem:[#allocation22_spill]] %s4191_s0  ;;  %v27_v0 = vstv %s4199_s8  ;;  %v29_v1 = vstv %s4212_s14 }
   0x2   :  { %4221 = sst [smem:[#allocation23_spill]] %s4192_s1  ;;  %28 = vst [vmem:[#allocation2] sm:$0x1] %v27_v0  ;;  %30 = vst [vmem:[#allocation3] sm:$0x1] %v29_v1 }
   0x3   :  { %4222 = sst [smem:[#allocation24_spill]] %s4193_s2 }
   0x4   :  { %4223 = sst [smem:[#allocation25_spill]] %s4194_s3 }
   0x5   :  { %4224 = sst [smem:[#allocation26_spill]] %s4195_s4 }
   0x6   :  { %4225 = sst [smem:[#allocation27_spill]] %s4196_s5 }
   0x7   :  { %4226 = sst [smem:[#allocation28_spill]] %s4200_s9 }
   0x8   :  { %4227 = sst [smem:[#allocation29_spill]] %s4202_s11 }
   0x9   :  { %4228 = sst [smem:[#allocation30_spill]] %s4204_s13 }
   0xa   :  { %4229 = sst [smem:[#allocation31_spill]] %s4208_s18 }
   0xb   :  { %4230 = sst [smem:[#allocation32_spill]] %s4209_s19 }
   0xc   :  { %4231 = sst [smem:[#allocation33_spill]] %s4210_s20 }
   0xd   :  { %4232 = sst [smem:[#allocation34_spill]] %s4211_s21 }
   0xe   :  { %31 = vsyncpa [#allocation5], 0 }
   0xf   :  { %33 = vsyncpa [#allocation5 + $0x1], 0 }
  0x10   :  { %34 = vsyncpa [#allocation7], 0 }
  0x11   :  { %35 = vsyncpa [#allocation10], 0 }
  0x12   :  { %36 = vsyncpa [#allocation13], 0 }
  0x13   :  { %37 = vsyncpa [#allocation16], 0  ;;  %s3575_s3 = smov 0   ;;  %s3577_s28 = smov 0  }
  0x14   :  { %s3579_s29 = smov 0   ;;  %s3581_s0 = smov 0  }
  0x15 LB: > { %s3442_s8 = smov [#allocation6]   ;;  %s3596_s4 = sadd.s32 4294967295, %s3440_s0   ;;  %s3440_s0 = sphi %s3581_s0, %s4265_s0   ;;  %s3436_s29 = sphi %s3579_s29, %s4264_s29   ;;  %s3432_s28 = sphi %s3577_s28, %s4263_s28   ;;  %s3428_s3 = sphi %s3575_s3, %s4262_s3  }
  0x16   : > { %s557_s14 = sshll.u32 %s3442_s8, 4  ;;  %p2605_p0 = scmp.ge.s32.totalorder %s3440_s0, 1  ;;  %s3601_s14 = int_to_ptr.vmem [resolvable:$true] %s557_s14 }
  0x17   : > { %p4218_p1 = scmp.eq.s32.totalorder %s3596_s4, 0  ;;  %p545_p2 = scmp.lt.s32.totalorder %s3440_s0, 3 }
  0x18   : > { %s3443_s5 = smov [#allocation9]   ;;  %s3444_s1 = smov [#allocation12]  }
  0x19   : > { %p3603_p3 = pnand %p2605_p0, %p545_p2  ;;  %s599_s22 = sshll.u32 %s3443_s5, 4  ;;  %s3615_s22 = int_to_ptr.vmem [resolvable:$true] %s599_s22 }
  0x1a   : > { %s629_s24 = sshll.u32 %s3444_s1, 4  ;;  %s4235_s26 = sld [smem:[#allocation25_spill]]  ;;  %s3617_s24 = int_to_ptr.vmem [resolvable:$true] %s629_s24 }
  0x1b   : > { %s4233_s30 = scalar_select %p3603_p3, 1, 0 }
  0x1c   : > { %p2883_p4 = pneg %p3603_p3 }
  0x1e   : > { %p3611_p5 = pnand %p2883_p4, %p4218_p1 }
  0x20   : > { %s3164_s27 = scalar_lea.hbm %s4235_s26, 512  ;;  %p3627_p7 = pneg %p3611_p5 }
  0x21   : > { %p3165_p6 = scmp.ne.s32.totalorder %s4235_s26, %s3164_s27  ;;  %p3171_p10 = scmp.lt.u32.totalorder %s3164_s27, %s4235_s26 }
  0x23   : > { %p3167_p8 = pnand %p3627_p7, %p3165_p6 }
  0x25   : > { %p3168_p9 = pneg %p3167_p8 }
  0x27   : > { %p3173_p11 = pnand %p3171_p10, %p3168_p9 }
  0x29   : > { %3176 = shalt.err (!%p3173_p11)
}
  0x2a   : > { %s3177_s20 = scalar_lea.vmem %s3601_s14, 512  ;;  %p3185_p2 = scmp.lt.s32.totalorder %s3601_s14, %s3601_s14 }
  0x2b   : > { %p3178_p12 = scmp.ne.s32.totalorder %s3601_s14, %s3177_s20  ;;  %p3186_p4 = scmp.lt.s32.totalorder %s3177_s20, %s3177_s20 }
  0x2d   : > { %p3180_p13 = pnand %p3178_p12, %p3627_p7  ;;  %p3187_p6 = por %p3186_p4, %p3185_p2 }
  0x2f   : > { %p3181_p0 = pneg %p3180_p13 }
  0x31   : > { %p3188_p8 = pnand %p3187_p6, %p3181_p0 }
  0x33   : > { %3191 = shalt.err (!%p3188_p8)
}
  0x34   : > { %s3445_s2 = smov 128   ;;  %s3446_s19 = smov 8  }
  0x35   : > { %2886 = dma.hbm_to_vmem [thread:$0]  (!%p3611_p5), %s4235_s26, 512, %s3601_s14, [#allocation7], %s3445_s2, %s3445_s2, %s3446_s19  }
  0x36   : > { %s4237_s11 = sld [smem:[#allocation29_spill]] }
  0x3c   : > { %s3192_s20 = scalar_lea.hbm %s4237_s11, 4096 }
  0x3d   : > { %p3193_p9 = scmp.ne.s32.totalorder %s4237_s11, %s3192_s20  ;;  %p3199_p12 = scmp.lt.u32.totalorder %s3192_s20, %s4237_s11 }
  0x3f   : > { %p3195_p10 = pnand %p3193_p9, %p3627_p7 }
  0x41   : > { %p3196_p11 = pneg %p3195_p10 }
  0x43   : > { %p3201_p13 = pnand %p3199_p12, %p3196_p11 }
  0x45   : > { %3204 = shalt.err (!%p3201_p13)
}
  0x46   : > { %s3205_s14 = scalar_lea.vmem %s3615_s22, 4096  ;;  %p3213_p6 = scmp.lt.s32.totalorder %s3615_s22, %s3615_s22 }
  0x47   : > { %p3206_p0 = scmp.ne.s32.totalorder %s3615_s22, %s3205_s14  ;;  %p3214_p8 = scmp.lt.s32.totalorder %s3205_s14, %s3205_s14 }
  0x49   : > { %p3208_p2 = pnand %p3206_p0, %p3627_p7  ;;  %p3215_p9 = por %p3214_p8, %p3213_p6 }
  0x4b   : > { %p3209_p4 = pneg %p3208_p2 }
  0x4d   : > { %p3216_p10 = pnand %p3215_p9, %p3209_p4 }
  0x4f   : > { %3219 = shalt.err (!%p3216_p10)
}
  0x50   : > { %2892 = dma.hbm_to_vmem [thread:$0]  (!%p3611_p5), %s4237_s11, 4096, %s3615_s22, [#allocation10], %s3445_s2, %s3445_s2, %s3446_s19  }
  0x51   : > { %s3220_s25 = scalar_lea.hbm %s4205_s15, 1536 }
  0x52   : > { %p3221_p11 = scmp.ne.s32.totalorder %s4205_s15, %s3220_s25  ;;  %p3227_p0 = scmp.lt.u32.totalorder %s3220_s25, %s4205_s15 }
  0x54   : > { %p3223_p12 = pnand %p3221_p11, %p3627_p7 }
  0x56   : > { %p3224_p13 = pneg %p3223_p12 }
  0x58   : > { %p3229_p2 = pnand %p3227_p0, %p3224_p13 }
  0x5a   : > { %3232 = shalt.err (!%p3229_p2)
}
  0x5b   : > { %s3233_s22 = scalar_lea.vmem %s3617_s24, 1536  ;;  %p3241_p9 = scmp.lt.s32.totalorder %s3617_s24, %s3617_s24 }
  0x5c   : > { %p3234_p4 = scmp.ne.s32.totalorder %s3617_s24, %s3233_s22  ;;  %p3242_p10 = scmp.lt.s32.totalorder %s3233_s22, %s3233_s22 }
  0x5e   : > { %p3236_p6 = pnand %p3234_p4, %p3627_p7  ;;  %p3243_p11 = por %p3242_p10, %p3241_p9 }
  0x60   : > { %p3237_p8 = pneg %p3236_p6 }
  0x62   : > { %p3244_p12 = pnand %p3243_p11, %p3237_p8 }
  0x64   : > { %3247 = shalt.err (!%p3244_p12)
}
  0x65   : > { %2898 = dma.hbm_to_vmem [thread:$0]  (!%p3611_p5), %s4205_s15, 1536, %s3617_s24, [#allocation13], %s3445_s2, %s3445_s2, %s3446_s19  }
  0x66   : > { %s3447_s13 = smov [#allocation8]   ;;  %s3448_s21 = smov [#allocation11]  }
  0x67   : > { %s589_s18 = sshll.u32 %s3447_s13, 4  ;;  %s613_s25 = sshll.u32 %s3448_s21, 4  ;;  %s590_s18 = int_to_ptr.vmem [resolvable:$true] %s589_s18  ;;  %s614_s25 = int_to_ptr.vmem [resolvable:$true] %s613_s25 }
  0x68   : > { %s3248_s1 = scalar_lea.hbm %s4201_s10, 32 }
  0x69   : > { %p3249_p13 = scmp.ne.s32.totalorder %s4201_s10, %s3248_s1  ;;  %p3255_p4 = scmp.lt.u32.totalorder %s3248_s1, %s4201_s10 }
  0x6b   : > { %p3251_p0 = pnand %p3249_p13, %p3627_p7 }
  0x6d   : > { %p3252_p2 = pneg %p3251_p0 }
  0x6f   : > { %p3257_p6 = pnand %p3255_p4, %p3252_p2 }
  0x71   : > { %3260 = shalt.err (!%p3257_p6)
}
  0x72   : > { %s3261_s24 = scalar_lea.vmem %s590_s18, 32  ;;  %p3269_p11 = scmp.lt.s32.totalorder %s590_s18, %s590_s18 }
  0x73   : > { %p3262_p8 = scmp.ne.s32.totalorder %s590_s18, %s3261_s24  ;;  %p3270_p12 = scmp.lt.s32.totalorder %s3261_s24, %s3261_s24 }
  0x75   : > { %p3264_p9 = pnand %p3262_p8, %p3627_p7  ;;  %p3271_p1 = por %p3270_p12, %p3269_p11 }
  0x77   : > { %p3265_p10 = pneg %p3264_p9 }
  0x79   : > { %p3272_p3 = pnand %p3271_p1, %p3265_p10 }
  0x7b   : > { %3275 = shalt.err (!%p3272_p3)
}
  0x7c   : > { %2889 = dma.hbm_to_vmem [thread:$0]  (!%p3611_p5), %s4201_s10, 32, %s590_s18, [#allocation7]  }
  0x7d   : > { %s3276_s27 = scalar_lea.hbm %s4203_s12, 32 }
  0x7e   : > { %p3277_p13 = scmp.ne.s32.totalorder %s4203_s12, %s3276_s27  ;;  %p3283_p3 = scmp.lt.u32.totalorder %s3276_s27, %s4203_s12 }
  0x80   : > { %p3279_p0 = pnand %p3277_p13, %p3627_p7 }
  0x82   : > { %p3280_p1 = pneg %p3279_p0 }
  0x84   : > { %p3285_p2 = pnand %p3283_p3, %p3280_p1 }
  0x86   : > { %3288 = shalt.err (!%p3285_p2)
}
  0x87   : > { %s3289_s14 = scalar_lea.vmem %s614_s25, 32  ;;  %p3297_p9 = scmp.lt.s32.totalorder %s614_s25, %s614_s25 }
  0x88   : > { %p3290_p4 = scmp.ne.s32.totalorder %s614_s25, %s3289_s14  ;;  %p3298_p10 = scmp.lt.s32.totalorder %s3289_s14, %s3289_s14 }
  0x8a   : > { %p3292_p6 = pnand %p3290_p4, %p3627_p7  ;;  %p3299_p11 = por %p3298_p10, %p3297_p9 }
  0x8c   : > { %p3293_p8 = pneg %p3292_p6 }
  0x8e   : > { %p3300_p12 = pnand %p3299_p11, %p3293_p8 }
  0x90   : > { %3303 = shalt.err (!%p3300_p12)
}
  0x91   : > { %2895 = dma.hbm_to_vmem [thread:$0]  (!%p3611_p5), %s4203_s12, 32, %s614_s25, [#allocation10]  }
  0x92   : > { %s3449_s9 = smov [#allocation14]   ;;  %s3450_s11 = smov [#allocation15]  }
  0x93   : > { %s642_s13 = sshll.u32 %s3449_s9, 4  ;;  %s656_s21 = sshll.u32 %s3450_s11, 4  ;;  %s643_s13 = int_to_ptr.vmem [resolvable:$true] %s642_s13  ;;  %s657_s21 = int_to_ptr.vmem [resolvable:$true] %s656_s21 }
  0x94   : > { %s3304_s1 = scalar_lea.hbm %s4206_s16, 1536 }
  0x95   : > { %p3305_p13 = scmp.ne.s32.totalorder %s4206_s16, %s3304_s1  ;;  %p3311_p3 = scmp.lt.u32.totalorder %s3304_s1, %s4206_s16 }
  0x97   : > { %p3307_p0 = pnand %p3305_p13, %p3627_p7 }
  0x99   : > { %p3308_p1 = pneg %p3307_p0 }
  0x9b   : > { %p3313_p2 = pnand %p3311_p3, %p3308_p1 }
  0x9d   : > { %3316 = shalt.err (!%p3313_p2)
}
  0x9e   : > { %s3317_s25 = scalar_lea.vmem %s643_s13, 1536  ;;  %p3325_p9 = scmp.lt.s32.totalorder %s643_s13, %s643_s13 }
  0x9f   : > { %p3318_p4 = scmp.ne.s32.totalorder %s643_s13, %s3317_s25  ;;  %p3326_p10 = scmp.lt.s32.totalorder %s3317_s25, %s3317_s25 }
  0xa1   : > { %p3320_p6 = pnand %p3318_p4, %p3627_p7  ;;  %p3327_p11 = por %p3326_p10, %p3325_p9 }
  0xa3   : > { %p3321_p8 = pneg %p3320_p6 }
  0xa5   : > { %p3328_p12 = pnand %p3327_p11, %p3321_p8 }
  0xa7   : > { %3331 = shalt.err (!%p3328_p12)
}
  0xa8   : > { %2901 = dma.hbm_to_vmem [thread:$0]  (!%p3611_p5), %s4206_s16, 1536, %s643_s13, [#allocation13], %s3445_s2, %s3445_s2, %s3446_s19  }
  0xa9   : > { %s3332_s8 = scalar_lea.hbm %s4207_s17, 32 }
  0xaa   : > { %p3333_p13 = scmp.ne.s32.totalorder %s4207_s17, %s3332_s8  ;;  %p3339_p3 = scmp.lt.u32.totalorder %s3332_s8, %s4207_s17 }
  0xac   : > { %p3335_p0 = pnand %p3333_p13, %p3627_p7 }
  0xae   : > { %p3336_p1 = pneg %p3335_p0 }
  0xb0   : > { %p3341_p2 = pnand %p3339_p3, %p3336_p1 }
  0xb2   : > { %3344 = shalt.err (!%p3341_p2)
}
  0xb3   : > { %s3345_s18 = scalar_lea.vmem %s657_s21, 32  ;;  %p3353_p9 = scmp.lt.s32.totalorder %s657_s21, %s657_s21 }
  0xb4   : > { %p3346_p4 = scmp.ne.s32.totalorder %s657_s21, %s3345_s18  ;;  %p3354_p10 = scmp.lt.s32.totalorder %s3345_s18, %s3345_s18 }
  0xb6   : > { %p3348_p6 = pnand %p3346_p4, %p3627_p7  ;;  %p3355_p11 = por %p3354_p10, %p3353_p9 }
  0xb8   : > { %p3349_p8 = pneg %p3348_p6 }
  0xba   : > { %p3356_p12 = pnand %p3355_p11, %p3349_p8 }
  0xbc   : > { %3359 = shalt.err (!%p3356_p12)
}
  0xbd   : > { %2904 = dma.hbm_to_vmem [thread:$0]  (!%p3611_p5), %s4207_s17, 32, %s657_s21, [#allocation16]  }
  0xbe   : > { %s3779_s5 = sadd.s32 1, %s3440_s0   ;;  %s50_s13 = sadd.s32 1, %s3436_s29 }
  0xbf   : > { %s47_s23 = ssub.s32 %s3440_s0, %s3779_s5  ;;  %p57_p13 = scmp.ne.s32.totalorder %s3436_s29, %s3432_s28 }
  0xc0   : > { %p48_p7 = scmp.eq.s32.totalorder %s47_s23, 0  ;;  %p58_p0 = scmp.eq.s32.totalorder %s3440_s0, 0 }
  0xc1   : > { %p63_p1 = scmp.ne.s32.totalorder %s3432_s28, %s3428_s3  ;;  %p4238_p2 = scmp.eq.s32.totalorder %s3596_s4, 0 }
  0xc2   : > { %s3790_s25 = scalar_select %p48_p7, %s3436_s29, %s50_s13  }
  0xc3   : > { %p59_p3 = por %p58_p0, %p57_p13  ;;  %p3794_p4 = por %p4238_p2, %p63_p1 }
  0xc4   : > { %p2916_p6 = scmp.lt.s32.totalorder %s3440_s0, 2  ;;  %s667_s9 = sand.u32 1, %s3436_s29  }
  0xc5   : > { %s2614_s21 = sshll.u32 %s667_s9, 3  ;;  %s2782_s11 = sshll.u32 %s3440_s0, 7 }
  0xc6   : > { %s4240_s1 = sld [smem:[#allocation22_spill]]  ;;  %s671_s3 = scalar_lea.vmem [#allocation4], %s2614_s21 }
  0xc7   : > { %s678_s22 = sshll.u32 %s671_s3, 4  ;;  %p3808_p5 = pnand %p2916_p6, %p59_p3  ;;  %s3806_s22 = int_to_ptr.vmem [resolvable:$true] %s678_s22 }
  0xc8   : > { %s3812_s0 = scalar_lea.sflag [#allocation5], %s667_s9 }
  0xc9   : > { %p3362_p9 = pneg %p3808_p5 }
  0xcc   : > { %s3804_s20 = scalar_lea.hbm %s4240_s1, %s2782_s11  ;;  %s3365_s23 = scalar_lea.hbm %s4240_s1, 256 }
  0xcd   : > { %s3360_s18 = scalar_lea.hbm %s3804_s20, 128  ;;  %p3366_p12 = scmp.lt.u32.totalorder %s3804_s20, %s4240_s1 }
  0xce   : > { %p3361_p8 = scmp.ne.s32.totalorder %s3804_s20, %s3360_s18  ;;  %p3367_p7 = scmp.lt.u32.totalorder %s3365_s23, %s3360_s18 }
  0xcf   : > { %p3369_p0 = scmp.lt.u32.totalorder %s3360_s18, %s3804_s20 }
  0xd0   : > { %p3363_p10 = pnand %p3362_p9, %p3361_p8  ;;  %p3368_p13 = por %p3367_p7, %p3366_p12 }
  0xd2   : > { %p3364_p11 = pneg %p3363_p10  ;;  %p3370_p1 = por %p3369_p0, %p3368_p13 }
  0xd4   : > { %p3371_p3 = pnand %p3370_p1, %p3364_p11 }
  0xd6   : > { %3374 = shalt.err (!%p3371_p3)
}
  0xd7   : > { %s3375_s9 = scalar_lea.vmem %s3806_s22, 128  ;;  %s3451_s11 = smov [#allocation4]  }
  0xd8   : > { %p3376_p2 = scmp.ne.s32.totalorder %s3806_s22, %s3375_s9  ;;  %s3380_s27 = sshll.u32 %s3451_s11, 4  ;;  %s3381_s27 = int_to_ptr.vmem [resolvable:$false] %s3380_s27 }
  0xd9   : > { %s3382_s8 = scalar_lea.vmem %s3381_s27, 256  ;;  %p3383_p10 = scmp.lt.s32.totalorder %s3806_s22, %s3381_s27 }
  0xda   : > { %p3378_p6 = pnand %p3376_p2, %p3362_p9  ;;  %p3384_p12 = scmp.lt.s32.totalorder %s3382_s8, %s3375_s9 }
  0xdc   : > { %p3379_p8 = pneg %p3378_p6  ;;  %p3385_p7 = por %p3384_p12, %p3383_p10 }
  0xde   : > { %p3386_p13 = pnand %p3385_p7, %p3379_p8 }
  0xe0   : > { %3389 = shalt.err (!%p3386_p13)
}
  0xe1   : > { %s3452_s3 = smov 64   ;;  %s3453_s18 = smov 4  }
  0xe2   : > { %2908 = dma.hbm_to_vmem [thread:$0]  (!%p3808_p5), %s3804_s20, 128, %s3806_s22, %s3812_s0, %s3452_s3, %s3452_s3, %s3453_s18  }
  0xe3   : > { %p4242_p9 = scmp.ne.s32.totalorder %s4233_s30, 0 }
  0xe4   : > { %s706_s2 = sand.u32 (!%p4242_p9), 1, %s3432_s28  }
  0xe5   : > { %704 = sbr.rel (%p4242_p9) target bundleno = 2070 (0x816), region = 92  ;;  %s2618_s19 = sshll.u32 (!%p4242_p9), %s706_s2, 3 }
  0xe6   : > { %s707_s23 = scalar_lea.sflag (!%p4242_p9), [#allocation5], %s706_s2  ;;  %s710_s13 = scalar_lea.vmem (!%p4242_p9), [#allocation4], %s2618_s19 }
  0xec   : > { %3407 = dma.done.wait (%p3794_p4), %s707_s23, 128  }
  0xed   : > { %3409 = vsyncadd (%p3794_p4), %s707_s23, 4294967168  ;;  %p4243_p11 = scmp.eq.s32.totalorder %s3596_s4, 0 }
  0xef   : > { %3411 = dma.done.wait (%p4243_p11), [#allocation7], 544   ;;  %p4244_p0 = pmov %p4243_p11 }
  0xf1   : > { %3413 = vsyncadd (%p4244_p0), [#allocation7], 4294966752  ;;  %p4245_p5 = pmov %p4244_p0 }
  0xf2   : > { %p4246_p1 = pmov %p4244_p0 }
  0xf3   : > { %3415 = dma.done.wait (%p4245_p5), [#allocation10], 4128  }
  0xf4   : > { %3417 = vsyncadd (%p4246_p1), [#allocation10], 4294963168  ;;  %p4247_p3 = pmov %p4244_p0 }
  0xf5   : > { %p4248_p2 = pmov %p4244_p0 }
  0xf6   : > { %3419 = dma.done.wait (%p4247_p3), [#allocation13], 3072  }
  0xf7   : > { %3421 = vsyncadd (%p4248_p2), [#allocation13], 4294964224  ;;  %p4249_p4 = pmov %p4244_p0 }
  0xf8   : > { %p4250_p6 = pmov %p4244_p0 }
  0xf9   : > { %3423 = dma.done.wait (%p4249_p4), [#allocation16], 32  }
  0xfa   : > { %3425 = vsyncadd (%p4250_p6), [#allocation16], 4294967264  ;;  %v3454_v2 = vmov 0   ;;  %v2974_v3 = vld [vmem:[#allocation6 + $0x4] ss:$8 sps:$4 sm:$0xff]   ;;  %v3866_v7 = vld [vmem:[%s710_s13] sm:$0xff]   ;;  %v853_v51 = vlaneseq }
  0xfb   : > { %924 = vmatprep.mubr.bf16.mxu0 %v3454_v2  ;;  %2972 = vset.pattern.permute.xlu0 %v3454_v2  ;;  %v2976_v4 = vld [vmem:[#allocation6] ss:$8 sps:$4 sm:$0xff]   ;;  %v2977_v5 = vld [vmem:[#allocation6 + $0x14] ss:$8 sps:$4 sm:$0xff]   ;;  %v2979_v6 = vld [vmem:[#allocation6 + $0x10] ss:$8 sps:$4 sm:$0xff]  }
  0xfc   : > { %2973 = vset.pattern.permute.xlu1 %v3454_v2  ;;  %892 = vmatprep.subr.bf16.mxu0 %v2974_v3  ;;  %s4251_s20 = sld [smem:[#allocation27_spill]]  ;;  %vm888_vm0 = vcmask 261120   ;;  %v3029_v40 = vld [vmem:[%s4198_s7 + $0x40] sm:$0xff]   ;;  %v3031_v42 = vld [vmem:[%s4198_s7 + $0x48] sm:$0xff]   ;;  %v3033_v44 = vld [vmem:[%s4198_s7 + $0x50] sm:$0xff]   ;;  %v854_v52 = vshrl.u32 %v853_v51, 7 }
  0xfd   : > { %893 = vmatpush1.bf16.msra.mxu0 %v2976_v4  ;;  %v3030_v41 = vld [vmem:[%s4198_s7] sm:$0xff]   ;;  %v3032_v43 = vld [vmem:[%s4198_s7 + $0x8] sm:$0xff]   ;;  %v3034_v45 = vld [vmem:[%s4198_s7 + $0x10] sm:$0xff]   ;;  %s4252_s27 = sld [smem:[#allocation26_spill]]  ;;  %p818_p8 = scmp.lt.s32.totalorder %s3596_s4, 1  ;;  %vm3456_vm2 = vmmov 0  }
  0xfe   : > { %894 = vmatprep.subr.bf16.mxu0 %v2977_v5  ;;  %v3035_v46 = vld [vmem:[%s4198_s7 + $0x58] sm:$0xff]   ;;  %v3037_v48 = vld [vmem:[%s4198_s7 + $0x60] sm:$0xff]   ;;  %v3039_v50 = vld [vmem:[%s4198_s7 + $0x68] sm:$0xff]   ;;  %v3999_v53 = vsub.s32 0, %v854_v52  ;;  %v4004_v55 = vsub.s32 1, %v854_v52  ;;  %s4253_s9 = sld [smem:[#allocation23_spill]] }
  0xff   : > { %v3036_v47 = vld [vmem:[%s4198_s7 + $0x18] sm:$0xff]   ;;  %v3038_v49 = vld [vmem:[%s4198_s7 + $0x20] sm:$0xff]   ;;  %s4267_s4 = smov (!%p818_p8, %s3596_s4), 1  ;;  %s4254_s3 = sld [smem:[#allocation24_spill]]  ;;  %vm1407_vm3 = vcmask 130048   ;;  %vm1546_vm8 = vcmask 523264  }
 0x100   : > { %s4028_s14 = sshll.u32 %s4267_s4, 3  ;;  %s3457_s23 = smov 32   ;;  %vm1548_vm9 = vcmask 785408   ;;  %vm2107_vm10 = vcmask 7168  }
 0x101   : > { %895 = vmatpush1.bf16.msra.mxu0 %v2979_v6  ;;  %s4255_s24 = sld [smem:[#allocation28_spill]]  ;;  %s4257_s0 = sld [smem:[#allocation30_spill]] }
 0x102   : > { %v2981_v8 = vld [vmem:[%s4251_s20 + $0x4] ss:$8 sps:$4 sm:$0xff]   ;;  %v2983_v9 = vld [vmem:[%s4251_s20] ss:$8 sps:$4 sm:$0xff]   ;;  %v2984_v10 = vld [vmem:[%s4251_s20 + $0x14] ss:$8 sps:$4 sm:$0xff]   ;;  %2785 = vmatprep.subr.bf16.mxu0 %v3029_v40 }
 0x103   : > { %1145 = vmatprep.subr.bf16.mxu1 %v2981_v8  ;;  %v2986_v11 = vld [vmem:[%s4251_s20 + $0x10] ss:$8 sps:$4 sm:$0xff]   ;;  %v2987_v12 = vld [vmem:[%s4251_s20 + $0x24] ss:$8 sps:$4 sm:$0xff]   ;;  %v2989_v13 = vld [vmem:[%s4251_s20 + $0x20] ss:$8 sps:$4 sm:$0xff]  }
 0x104   : > { %1146 = vmatpush1.bf16.msra.mxu1 %v2983_v9  ;;  %2639 = vmatmul.mubr.msk.bf16.vlgmr.msra.gmra.mrb[0].mxu0 %vm888_vm0, %v3866_v7  ;;  %v2990_v14 = vld [vmem:[%s4251_s20 + $0x34] ss:$8 sps:$4 sm:$0xff]   ;;  %v2992_v15 = vld [vmem:[%s4251_s20 + $0x30] ss:$8 sps:$4 sm:$0xff]   ;;  %v2993_v16 = vld [vmem:[%s4251_s20 + $0x44] ss:$8 sps:$4 sm:$0xff]   ;;  %s821_s11 = scalar_lea.vmem %s4253_s9, %s4028_s14 }
 0x105   : > { %1147 = vmatprep.subr.bf16.mxu1 %v2984_v10  ;;  %v2995_v17 = vld [vmem:[%s4251_s20 + $0x40] ss:$8 sps:$4 sm:$0xff]   ;;  %v2996_v18 = vld [vmem:[%s4251_s20 + $0x54] ss:$8 sps:$4 sm:$0xff]   ;;  %v2998_v19 = vld [vmem:[%s4251_s20 + $0x50] ss:$8 sps:$4 sm:$0xff]   ;;  %2786 = vmatpush3.bf16.msra.mxu0 %v3030_v41  ;;  %s825_s18 = scalar_lea.vmem %s4254_s3, %s4028_s14 }
 0x106   : > { %v2999_v20 = vld [vmem:[%s4251_s20 + $0x64] ss:$8 sps:$4 sm:$0xff]   ;;  %v3001_v21 = vld [vmem:[%s4251_s20 + $0x60] ss:$8 sps:$4 sm:$0xff]   ;;  %v3002_v22 = vld [vmem:[%s4251_s20 + $0x74] ss:$8 sps:$4 sm:$0xff]   ;;  %2787 = vmatprep.subr.bf16.mxu0 %v3031_v42 }
 0x107   : > { %v3004_v23 = vld [vmem:[%s4251_s20 + $0x70] ss:$8 sps:$4 sm:$0xff]   ;;  %v3005_v24 = vld [vmem:[%s4251_s20 + $0x84] ss:$8 sps:$4 sm:$0xff]   ;;  %v3007_v25 = vld [vmem:[%s4251_s20 + $0x80] ss:$8 sps:$4 sm:$0xff]   ;;  %s4258_s21 = smov %s4257_s0 }
 0x108   : > { %1148 = vmatpush1.bf16.msra.mxu1 %v2986_v11  ;;  %v3008_v26 = vld [vmem:[%s4251_s20 + $0x94] ss:$8 sps:$4 sm:$0xff]   ;;  %v3010_v27 = vld [vmem:[%s4251_s20 + $0x90] ss:$8 sps:$4 sm:$0xff]   ;;  %v3011_v28 = vld [vmem:[%s4251_s20 + $0xa4] ss:$8 sps:$4 sm:$0xff]  }
 0x109   : > { %1149 = vmatprep.subr.bf16.mxu1 %v2987_v12  ;;  %v3013_v29 = vld [vmem:[%s4251_s20 + $0xa0] ss:$8 sps:$4 sm:$0xff]   ;;  %v3014_v30 = vld [vmem:[%s4251_s20 + $0xb4] ss:$8 sps:$4 sm:$0xff]   ;;  %v3016_v31 = vld [vmem:[%s4251_s20 + $0xb0] ss:$8 sps:$4 sm:$0xff]   ;;  %2788 = vmatpush3.bf16.msra.mxu0 %v3032_v43 }
 0x10a   : > { %v3017_v32 = vld [vmem:[%s4251_s20 + $0xc4] ss:$8 sps:$4 sm:$0xff]   ;;  %v3019_v33 = vld [vmem:[%s4251_s20 + $0xc0] ss:$8 sps:$4 sm:$0xff]   ;;  %v3020_v34 = vld [vmem:[%s4251_s20 + $0xd4] ss:$8 sps:$4 sm:$0xff]   ;;  %2789 = vmatprep.subr.bf16.mxu0 %v3033_v44 }
 0x10b   : > { %v3022_v35 = vld [vmem:[%s4251_s20 + $0xd0] ss:$8 sps:$4 sm:$0xff]   ;;  %v3023_v36 = vld [vmem:[%s4251_s20 + $0xe4] ss:$8 sps:$4 sm:$0xff]   ;;  %v3025_v37 = vld [vmem:[%s4251_s20 + $0xe0] ss:$8 sps:$4 sm:$0xff]  }
 0x10c   : > { %1150 = vmatpush1.bf16.msra.mxu1 %v2989_v13  ;;  %v3026_v38 = vld [vmem:[%s4251_s20 + $0xf4] ss:$8 sps:$4 sm:$0xff]   ;;  %v3028_v39 = vld [vmem:[%s4251_s20 + $0xf0] ss:$8 sps:$4 sm:$0xff]   ;;  %v851_v54 = vld [vmem:[%s4252_s27] sm:$0x3] }
 0x10d   : > { %1151 = vmatprep.subr.bf16.mxu1 %v2990_v14  ;;  %2790 = vmatpush3.bf16.msra.mxu0 %v3034_v45  ;;  %v856_v56 = vrot.slane %v851_v54, %v3999_v53  ;;  %v860_v57 = vrot.slane %v851_v54, %v4004_v55  ;;  %v3040_v10 = vld [vmem:[%s4198_s7 + $0x28] sm:$0xff]   ;;  %v3041_v11 = vld [vmem:[%s4198_s7 + $0x70] sm:$0xff]   ;;  %v3043_v13 = vld [vmem:[%s4198_s7 + $0x78] sm:$0xff]   ;;  %s2783_s3 = sshll.u32 %s4267_s4, 4  ;;  %s4259_s19 = sld [smem:[#allocation34_spill]] }
 0x10e   : > { %2791 = vmatprep.subr.bf16.mxu0 %v3035_v46  ;;  %v3042_v12 = vld [vmem:[%s4198_s7 + $0x30] sm:$0xff]   ;;  %v3044_v14 = vld [vmem:[%s4198_s7 + $0x38] sm:$0xff]   ;;  %v2672_v45 = vld [vmem:[#allocation2] ss:$0 sm:$0xff]  ;;  %s4260_s22 = sld [smem:[#allocation32_spill]]  ;;  %s4261_s27 = sld [smem:[#allocation33_spill]] }
 0x110   : > { %1152 = vmatpush1.bf16.msra.mxu1 %v2992_v15  ;;  %v1372_v15 = vld [vmem:[%s821_s11] sm:$0xff] }
 0x111   : > { %1153 = vmatprep.subr.bf16.mxu1 %v2993_v16  ;;  %2792 = vmatpush3.bf16.msra.mxu0 %v3036_v47  ;;  %v1373_v16 = vld [vmem:[%s825_s18] sm:$0xff]  ;;  %s3458_s18 = smov 64  }
 0x112   : > { %2793 = vmatprep.subr.bf16.mxu0 %v3037_v48  ;;  %1375 = vperm.xlu0 %2972, %v1372_v15   ;;  %v3059_v15 = vld [vmem:[%s4255_s24 + $0x44] ss:$8 sps:$4 sm:$0xff]  }
 0x114   : > { %1154 = vmatpush1.bf16.msra.mxu1 %v2995_v17  ;;  %v973_v17 = vld [vmem:[%s4197_s6] sm:$0x3]  ;;  %s838_s8 = scalar_lea.vmem %s4261_s27, %s2783_s3 }
 0x115   : > { %1155 = vmatprep.subr.bf16.mxu1 %v2996_v18  ;;  %2794 = vmatpush3.bf16.msra.mxu0 %v3038_v49  ;;  %v978_v18 = vrot.slane %v973_v17, %v3999_v53 }
 0x116   : > { %2795 = vmatprep.subr.bf16.mxu0 %v3039_v50  ;;  %1381 = vperm.xlu0 %2972, %v1373_v16   ;;  %v3057_v16 = vld [vmem:[%s4255_s24 + $0x40] ss:$8 sps:$4 sm:$0xff]  }
 0x118   : > { %1156 = vmatpush1.bf16.msra.mxu1 %v2998_v19  ;;  %v982_v19 = vrot.slane %v973_v17, %v4004_v55  ;;  %v3062_v17 = vld [vmem:[%s4255_s24 + $0x54] ss:$8 sps:$4 sm:$0xff]  }
 0x119   : > { %1157 = vmatprep.subr.bf16.mxu1 %v2999_v20  ;;  %2796 = vmatpush3.bf16.msra.mxu0 %v3040_v10  ;;  %v3048_v10 = vld [vmem:[%s4255_s24 + $0x10] ss:$8 sps:$4 sm:$0xff]  }
 0x11a   : > { %2797 = vmatprep.subr.bf16.mxu0 %v3041_v11  ;;  %v3053_v11 = vld [vmem:[%s4255_s24 + $0x24] ss:$8 sps:$4 sm:$0xff]  }
 0x11c   : > { %1158 = vmatpush1.bf16.msra.mxu1 %v3001_v21 }
 0x11d   : > { %1159 = vmatprep.subr.bf16.mxu1 %v3002_v22  ;;  %2798 = vmatpush3.bf16.msra.mxu0 %v3042_v12  ;;  %v3051_v12 = vld [vmem:[%s4255_s24 + $0x20] ss:$8 sps:$4 sm:$0xff]  }
 0x11e   : > { %2799 = vmatprep.subr.bf16.mxu0 %v3043_v13  ;;  %v3056_v13 = vld [vmem:[%s4255_s24 + $0x34] ss:$8 sps:$4 sm:$0xff]  }
 0x120   : > { %1160 = vmatpush1.bf16.msra.mxu1 %v3004_v23 }
 0x121   : > { %1161 = vmatprep.subr.bf16.mxu1 %v3005_v24  ;;  %2800 = vmatpush3.bf16.msra.mxu0 %v3044_v14  ;;  %v3054_v14 = vld [vmem:[%s4255_s24 + $0x30] ss:$8 sps:$4 sm:$0xff]  }
 0x124   : > { %1162 = vmatpush1.bf16.msra.mxu1 %v3007_v25 }
 0x125   : > { %1163 = vmatprep.subr.bf16.mxu1 %v3008_v26 }
 0x128   : > { %1164 = vmatpush1.bf16.msra.mxu1 %v3010_v27 }
 0x129   : > { %1165 = vmatprep.subr.bf16.mxu1 %v3011_v28 }
 0x12c   : > { %1166 = vmatpush1.bf16.msra.mxu1 %v3013_v29 }
 0x12d   : > { %1167 = vmatprep.subr.bf16.mxu1 %v3014_v30 }
 0x130   : > { %1168 = vmatpush1.bf16.msra.mxu1 %v3016_v31 }
 0x131   : > { %1169 = vmatprep.subr.bf16.mxu1 %v3017_v32 }
 0x134   : > { %1170 = vmatpush1.bf16.msra.mxu1 %v3019_v33 }
 0x135   : > { %1171 = vmatprep.subr.bf16.mxu1 %v3020_v34  ;;  %v1371_v34 = vand.u32 127, %v853_v51 }
 0x138   : > { %1172 = vmatpush1.bf16.msra.mxu1 %v3022_v35 }
 0x139   : > { %1173 = vmatprep.subr.bf16.mxu1 %v3023_v36  ;;  %v3455_v36 = vmov 0.0  }
 0x13a   : > { %2835 = vmatprep.subr.bf16.mxu0 %v3455_v36 }
 0x13c   : > { %1174 = vmatpush1.bf16.msra.mxu1 %v3025_v37 }
 0x13d   : > { %1175 = vmatprep.subr.bf16.mxu1 %v3026_v38 }
 0x140   : > { %1176 = vmatpush1.bf16.msra.mxu1 %v3028_v39 }
 0x191   : > { %v1376_v35 = vpop.permute.xlu0 %1375 }
 0x192   : > { %vm1377_vm1 = vcmp.eq.s32.totalorder %v1371_v34, %v1376_v35  ;;  %vm1386_vm4 = vcmp.ge.s32.totalorder %v1371_v34, %v1376_v35  ;;  %v3083_v35 = vld [vmem:[#allocation9 + $0x64] ss:$8 sps:$4 sm:$0xff]  }
 0x193   : > { %v1378_v37 = vsel %vm1377_vm1, 1.0, %v3455_v36 }
 0x194   : > { %v1379_v38 = vpack.c.bf16 %v1378_v37, %v1378_v37  ;;  %v3086_v37 = vld [vmem:[#allocation9 + $0x74] ss:$8 sps:$4 sm:$0xff]  }
 0x195   : > { %v1382_v39 = vpop.permute.xlu0 %1381 }
 0x196   : > { %vm1383_vm5 = vcmp.eq.s32.totalorder %v1371_v34, %v1382_v39  ;;  %vm1387_vm6 = vcmp.le.s32.totalorder %v1371_v34, %v1382_v39  ;;  %v3078_v34 = vld [vmem:[#allocation9 + $0x50] ss:$8 sps:$4 sm:$0xff]   ;;  %v3089_v39 = vld [vmem:[#allocation9 + $0x84] ss:$8 sps:$4 sm:$0xff]  }
 0x197   : > { %v1384_v40 = vsel %vm1383_vm5, 1.0, %v3455_v36  ;;  %vm1388_vm7 = vmand %vm1386_vm4, %vm1387_vm6 }
 0x198   : > { %v1385_v41 = vpack.c.bf16 %v1384_v40, %v1384_v40  ;;  %v1389_v42 = vsel %vm1388_vm7, 1.0, %v3455_v36  ;;  %v3087_v40 = vld [vmem:[#allocation9 + $0x80] ss:$8 sps:$4 sm:$0xff]  }
 0x1d7   : > { %v926_v58 = vpop.f32.mrb[0].mxu0 }
 0x1d8   : > { %v927_v59 = vadd.f32 %v926_v58, %v856_v56  ;;  %v928_v60 = vpop.f32.mrb[1].mxu0 }
 0x1d9   : > { %v929_v61 = vadd.f32 %v928_v60, %v860_v57  ;;  %v930_v62 = vpop.f32.mrb[2].mxu0 }
 0x1da   : > { %v931_v63 = vadd.f32 %v930_v62, %v856_v56  ;;  %v932_v0 = vpop.f32.mrb[3].mxu0  ;;  %v935_v3 = vmax.f32 %v927_v59, 0.0 }
 0x1db   : > { %v933_v1 = vadd.f32 %v932_v0, %v860_v57  ;;  %v936_v5 = vmax.f32 %v929_v61, 0.0  ;;  %v1392_v0 = vunpack.c.h.bf16 %v3866_v7 }
 0x1dc   : > { %v937_v4 = vmax.f32 %v931_v63, 0.0  ;;  %v1391_v63 = vunpack.c.l.bf16 %v3866_v7 }
 0x1dd   : > { %v938_v6 = vmax.f32 %v933_v1, 0.0 }
 0x1de   : > { %v939_v8 = vpack.c.bf16 %v937_v4, %v935_v3 }
 0x1df   : > { %v940_v9 = vpack.c.bf16 %v938_v6, %v936_v5  ;;  %v1390_v6 = vpack.c.bf16 %v1389_v42, %v1389_v42  ;;  %v3090_v42 = vld [vmem:[#allocation9 + $0x90] ss:$8 sps:$4 sm:$0xff]  }
 0x1e1   : > { %1177 = vmatprep.mubr.bf16.mxu1 %v940_v9  ;;  %v3047_v9 = vld [vmem:[%s4255_s24 + $0x4] ss:$8 sps:$4 sm:$0xff]  }
 0x1e2   : > { %1178 = vmatmul.mubr.bf16.vlgmr.msra.gmra.mrb[0].mxu1 %v939_v8  ;;  %v3045_v8 = vld [vmem:[%s4255_s24] ss:$8 sps:$4 sm:$0xff]  }
 0x2b5   : > { %v1179_v20 = vpop.f32.mrb[0].mxu1 }
 0x2b6   : > { %v1180_v21 = vadd.f32 %v1179_v20, %v978_v18  ;;  %v1181_v22 = vpop.f32.mrb[1].mxu1  ;;  %v3065_v20 = vld [vmem:[#allocation9 + $0x4] ss:$8 sps:$4 sm:$0xff]  }
 0x2b7   : > { %v1182_v23 = vadd.f32 %v1181_v22, %v982_v19  ;;  %v1183_v24 = vpop.f32.mrb[2].mxu1  ;;  %1887 = vmatprep.subr.bf16.mxu1 %v3065_v20  ;;  %v3066_v22 = vld [vmem:[#allocation9 + $0x10] ss:$8 sps:$4 sm:$0xff]  }
 0x2b8   : > { %v1184_v25 = vadd.f32 %v1183_v24, %v978_v18  ;;  %v1185_v26 = vpop.f32.mrb[3].mxu1  ;;  %v1188_v28 = vmax.f32 %v1180_v21, 0.0  ;;  %v3060_v18 = vld [vmem:[%s4255_s24 + $0x50] ss:$8 sps:$4 sm:$0xff]   ;;  %v3069_v24 = vld [vmem:[#allocation9 + $0x20] ss:$8 sps:$4 sm:$0xff]  }
 0x2b9   : > { %v1186_v27 = vadd.f32 %v1185_v26, %v982_v19  ;;  %v1189_v30 = vmax.f32 %v1182_v23, 0.0  ;;  %v3063_v19 = vld [vmem:[#allocation9] ss:$8 sps:$4 sm:$0xff]   ;;  %v3068_v21 = vld [vmem:[#allocation9 + $0x14] ss:$8 sps:$4 sm:$0xff]  }
 0x2ba   : > { %v1190_v29 = vmax.f32 %v1184_v25, 0.0  ;;  %1888 = vmatpush1.bf16.msra.mxu1 %v3063_v19  ;;  %v3071_v23 = vld [vmem:[#allocation9 + $0x24] ss:$8 sps:$4 sm:$0xff]   ;;  %v3074_v25 = vld [vmem:[#allocation9 + $0x34] ss:$8 sps:$4 sm:$0xff]  }
 0x2bb   : > { %v1191_v31 = vmax.f32 %v1186_v27, 0.0  ;;  %1889 = vmatprep.subr.bf16.mxu1 %v3068_v21 }
 0x2bc   : > { %v1192_v32 = vpack.c.bf16 %v1190_v29, %v1188_v28  ;;  %v3072_v29 = vld [vmem:[#allocation9 + $0x30] ss:$8 sps:$4 sm:$0xff]  }
 0x2bd   : > { %v1193_v33 = vpack.c.bf16 %v1191_v31, %v1189_v30  ;;  %v3077_v31 = vld [vmem:[#allocation9 + $0x44] ss:$8 sps:$4 sm:$0xff]  }
 0x2be   : > { %1890 = vmatpush1.bf16.msra.mxu1 %v3066_v22 }
 0x2bf   : > { %1361 = vmatprep.mubr.bf16.mxu0 %v1193_v33  ;;  %1891 = vmatprep.subr.bf16.mxu1 %v3071_v23  ;;  %v3080_v33 = vld [vmem:[#allocation9 + $0x54] ss:$8 sps:$4 sm:$0xff]  }
 0x2c0   : > { %1362 = vmatmul.mubr.bf16.vlgmr.msra.gmra.mrb[4].mxu0 %v1192_v32  ;;  %v3075_v32 = vld [vmem:[#allocation9 + $0x40] ss:$8 sps:$4 sm:$0xff]  }
 0x2c1   : > { %2836 = vmatpush3.bf16.msra.mxu0 %v3866_v7  ;;  %2837 = vmatprep.mubr.msk.bf16.mxu0 %vm3456_vm2, %v3455_v36 }
 0x2c2   : > { %2841 = vmatprep.subr.bf16.mxu0 %v3455_v36  ;;  %1892 = vmatpush1.bf16.msra.mxu1 %v3069_v24  ;;  %v3111_v24 = vld [vmem:[#allocation14] ss:$8 sps:$4 sm:$0xff]  }
 0x2c3   : > { %1893 = vmatprep.subr.bf16.mxu1 %v3074_v25 }
 0x2c6   : > { %1894 = vmatpush1.bf16.msra.mxu1 %v3072_v29  ;;  %v3117_v29 = vld [vmem:[#allocation14 + $0x20] ss:$8 sps:$4 sm:$0xff]  }
 0x2c7   : > { %1895 = vmatprep.subr.bf16.mxu1 %v3077_v31  ;;  %v3120_v31 = vld [vmem:[#allocation14 + $0x30] ss:$8 sps:$4 sm:$0xff]  }
 0x2c8   : > { %2838 = vmatmul.mubr.msk.bf16.vlgmr.msra.gmra.mrb[8].mxu0 %vm1407_vm3, %v1379_v38  ;;  %v3084_v38 = vld [vmem:[#allocation9 + $0x70] ss:$8 sps:$4 sm:$0xff]  }
 0x2c9   : > { %2842 = vmatpush3.bf16.msra.mxu0 %v3866_v7  ;;  %2843 = vmatprep.mubr.msk.bf16.mxu0 %vm3456_vm2, %v3455_v36  ;;  %v3050_v7 = vld [vmem:[%s4255_s24 + $0x14] ss:$8 sps:$4 sm:$0xff]  }
 0x2ca   : > { %2847 = vmatprep.subr.bf16.mxu0 %v3455_v36  ;;  %1896 = vmatpush1.bf16.msra.mxu1 %v3075_v32  ;;  %v3125_v32 = vld [vmem:[#allocation14 + $0x44] ss:$8 sps:$4 sm:$0xff]  }
 0x2cb   : > { %1897 = vmatprep.subr.bf16.mxu1 %v3080_v33  ;;  %v3123_v33 = vld [vmem:[#allocation14 + $0x40] ss:$8 sps:$4 sm:$0xff]  }
 0x2ce   : > { %1898 = vmatpush1.bf16.msra.mxu1 %v3078_v34  ;;  %v3128_v34 = vld [vmem:[#allocation14 + $0x54] ss:$8 sps:$4 sm:$0xff]  }
 0x2cf   : > { %1899 = vmatprep.subr.bf16.mxu1 %v3083_v35  ;;  %v3126_v35 = vld [vmem:[#allocation14 + $0x50] ss:$8 sps:$4 sm:$0xff]  }
 0x2d0   : > { %2844 = vmatmul.mubr.msk.bf16.vlgmr.msra.gmra.mrb[12].mxu0 %vm1407_vm3, %v1385_v41  ;;  %v3092_v41 = vld [vmem:[#allocation9 + $0x94] ss:$8 sps:$4 sm:$0xff]  }
 0x2d1   : > { %2849 = vmatprep.mubr.msk.bf16.mxu0 %vm3456_vm2, %v3455_v36  ;;  %v3081_v36 = vld [vmem:[#allocation9 + $0x60] ss:$8 sps:$4 sm:$0xff]  }
 0x2d2   : > { %1900 = vmatpush1.bf16.msra.mxu1 %v3081_v36  ;;  %v3141_v36 = vld [vmem:[%s4258_s21 + $0x70] sm:$0xff]  }
 0x2d3   : > { %1901 = vmatprep.subr.bf16.mxu1 %v3086_v37  ;;  %v3142_v37 = vld [vmem:[%s4258_s21 + $0x30] sm:$0xff]  }
 0x2d6   : > { %1902 = vmatpush1.bf16.msra.mxu1 %v3084_v38  ;;  %v3143_v38 = vld [vmem:[%s4258_s21 + $0x78] sm:$0xff]  }
 0x2d7   : > { %1903 = vmatprep.subr.bf16.mxu1 %v3089_v39  ;;  %v3144_v39 = vld [vmem:[%s4258_s21 + $0x38] sm:$0xff]  }
 0x2da   : > { %1904 = vmatpush1.bf16.msra.mxu1 %v3087_v40  ;;  %v3147_v40 = vld [vmem:[#allocation12 + $0x4] ss:$8 sps:$4 sm:$0xff]  }
 0x2db   : > { %1905 = vmatprep.subr.bf16.mxu1 %v3092_v41  ;;  %v1715_v41 = vld [vmem:[#allocation11] sm:$0x3] }
 0x2de   : > { %1906 = vmatpush1.bf16.msra.mxu1 %v3090_v42  ;;  %v1720_v42 = vrot.slane %v1715_v41, %v3999_v53 }
 0x393   : > { %v2801_v43 = vpop.f32.mrb[4].mxu0 }
 0x394   : > { %v2802_v44 = vpop.f32.mrb[5].mxu0 }
 0x395   : > { %v2803_v46 = vadd.f32 %v2802_v44, %v2801_v43  ;;  %v2804_v47 = vpop.f32.mrb[6].mxu0  ;;  %v3095_v43 = vld [vmem:[#allocation9 + $0xa4] ss:$8 sps:$4 sm:$0xff]   ;;  %v3093_v44 = vld [vmem:[#allocation9 + $0xa0] ss:$8 sps:$4 sm:$0xff]  }
 0x396   : > { %v2805_v48 = vpop.f32.mrb[7].mxu0  ;;  %1907 = vmatprep.subr.bf16.mxu1 %v3095_v43  ;;  %v1724_v43 = vrot.slane %v1715_v41, %v4004_v55 }
 0x397   : > { %v2806_v49 = vadd.f32 %v2805_v48, %v2804_v47  ;;  %v1364_v50 = vadd.f32 %v2803_v46, %v2672_v45  ;;  %1908 = vmatpush1.bf16.msra.mxu1 %v3093_v44  ;;  %v3096_v46 = vld [vmem:[#allocation9 + $0xb0] ss:$8 sps:$4 sm:$0xff]   ;;  %v3101_v47 = vld [vmem:[#allocation9 + $0xc4] ss:$8 sps:$4 sm:$0xff]   ;;  %v3099_v48 = vld [vmem:[#allocation9 + $0xc0] ss:$8 sps:$4 sm:$0xff]  }
 0x399   : > { %1395 = vperm.xlu1 %2973, %v1364_v50   ;;  %v1367_v51 = vadd.f32 %v2806_v49, %v2672_v45  ;;  %v3098_v45 = vld [vmem:[#allocation9 + $0xb4] ss:$8 sps:$4 sm:$0xff]   ;;  %v3102_v50 = vld [vmem:[#allocation9 + $0xd0] ss:$8 sps:$4 sm:$0xff]  }
 0x39a   : > { %1909 = vmatprep.subr.bf16.mxu1 %v3098_v45  ;;  %v3104_v49 = vld [vmem:[#allocation9 + $0xd4] ss:$8 sps:$4 sm:$0xff]  }
 0x39b   : > { %v4050_v52 = vpop.f32.mrb[8].mxu0  ;;  %1910 = vmatpush1.bf16.msra.mxu1 %v3096_v46 }
 0x39c   : > { %v2839_v54 = vpop.f32.mrb[9].mxu0  ;;  %1911 = vmatprep.subr.bf16.mxu1 %v3101_v47 }
 0x39d   : > { %1400 = vperm.xlu1 %2973, %v1367_v51   ;;  %v1448_v56 = vpop.f32.mrb[10].mxu0 }
 0x39e   : > { %v2840_v57 = vpop.f32.mrb[11].mxu0 }
 0x39f   : > { %1912 = vmatpush1.bf16.msra.mxu1 %v3099_v48 }
 0x3a0   : > { %1913 = vmatprep.subr.bf16.mxu1 %v3104_v49 }
 0x3a3   : > { %v1488_v58 = vpop.f32.mrb[12].mxu0  ;;  %1914 = vmatpush1.bf16.msra.mxu1 %v3102_v50 }
 0x3a4   : > { %1538 = vrot.lane.b32.xlu0 %v1488_v58, %s3457_s23  ;;  %v2845_v59 = vpop.f32.mrb[13].mxu0  ;;  %s4256_s23 = sld [smem:[#allocation31_spill]] }
 0x3a5   : > { %v1491_v60 = vpop.f32.mrb[14].mxu0  ;;  %v3107_v59 = vld [vmem:[#allocation9 + $0xe4] ss:$8 sps:$4 sm:$0xff]  }
 0x3a6   : > { %v2846_v61 = vpop.f32.mrb[15].mxu0  ;;  %v3105_v60 = vld [vmem:[#allocation9 + $0xe0] ss:$8 sps:$4 sm:$0xff]   ;;  %1915 = vmatprep.subr.bf16.mxu1 %v3107_v59 }
 0x3a7   : > { %1916 = vmatpush1.bf16.msra.mxu1 %v3105_v60  ;;  %v3110_v61 = vld [vmem:[#allocation9 + $0xf4] ss:$8 sps:$4 sm:$0xff]  }
 0x3a8   : > { %1917 = vmatprep.subr.bf16.mxu1 %v3110_v61  ;;  %v3150_v59 = vld [vmem:[#allocation12 + $0x14] ss:$8 sps:$4 sm:$0xff]   ;;  %v3148_v60 = vld [vmem:[#allocation12 + $0x10] ss:$8 sps:$4 sm:$0xff]   ;;  %v3153_v61 = vld [vmem:[#allocation12 + $0x24] ss:$8 sps:$4 sm:$0xff]  }
 0x3aa   : > { %s829_s13 = scalar_lea.vmem %s4256_s23, %s4028_s14  ;;  %s843_s23 = scalar_lea.vmem %s4259_s19, %s2783_s3 }
 0x416   : > { %v1539_v51 = vpop.permute.xlu0 %1538 }
 0x417   : > { %v1545_v54 = vsel %vm888_vm0, %v4050_v52, %v1539_v51  ;;  %v3129_v52 = vld [vmem:[%s4257_s0 + $0x40] sm:$0xff]   ;;  %s833_s0 = scalar_lea.vmem %s4260_s22, %s4028_s14 }
 0x418   : > { %v1396_v62 = vpop.permute.xlu1 %1395 }
 0x419   : > { %v1403_v3 = vmul.f32 %v1396_v62, %v1391_v63  ;;  %v3108_v62 = vld [vmem:[#allocation9 + $0xf0] ss:$8 sps:$4 sm:$0xff]  }
 0x41a   : > { %1918 = vmatpush1.bf16.msra.mxu1 %v3108_v62  ;;  %v3113_v63 = vld [vmem:[#allocation14 + $0x4] ss:$8 sps:$4 sm:$0xff]   ;;  %v3151_v62 = vld [vmem:[#allocation12 + $0x20] ss:$8 sps:$4 sm:$0xff]  }
 0x41b   : > { %2308 = vmatprep.subr.bf16.mxu1 %v3113_v63  ;;  %v3156_v63 = vld [vmem:[#allocation12 + $0x34] ss:$8 sps:$4 sm:$0xff]  }
 0x41c   : > { %v1401_v1 = vpop.permute.xlu1 %1400 }
 0x41d   : > { %v1404_v4 = vmul.f32 %v1401_v1, %v1392_v0  ;;  %v3130_v0 = vld [vmem:[%s4258_s21] sm:$0xff]   ;;  %v3131_v1 = vld [vmem:[%s4258_s21 + $0x48] sm:$0xff]  }
 0x41f   : > { %v1405_v5 = vpack.c.bf16 %v1404_v4, %v1403_v3  ;;  %v3132_v3 = vld [vmem:[%s4258_s21 + $0x8] sm:$0xff]   ;;  %v3133_v4 = vld [vmem:[%s4258_s21 + $0x50] sm:$0xff]  }
 0x421   : > { %2848 = vmatpush3.bf16.msra.mxu0 %v1405_v5  ;;  %v3134_v5 = vld [vmem:[%s4258_s21 + $0x10] sm:$0xff]  }
 0x422   : > { %1638 = vmatprep.subr.bf16.mxu0 %v3047_v9  ;;  %v3137_v9 = vld [vmem:[%s4258_s21 + $0x60] sm:$0xff]  }
 0x424   : > { %2850 = vmatmul.mubr.msk.bf16.vlgmr.msra.gmra.mrb[16].mxu0 %vm1407_vm3, %v1390_v6  ;;  %v3135_v6 = vld [vmem:[%s4258_s21 + $0x58] sm:$0xff]  }
 0x425   : > { %1670 = vmatprep.mubr.bf16.mxu0 %v3454_v2  ;;  %1639 = vmatpush1.bf16.msra.mxu0 %v3045_v8  ;;  %v3136_v8 = vld [vmem:[%s4258_s21 + $0x18] sm:$0xff]  }
 0x426   : > { %1640 = vmatprep.subr.bf16.mxu0 %v3050_v7  ;;  %v3138_v7 = vld [vmem:[%s4258_s21 + $0x20] sm:$0xff]  }
 0x429   : > { %1641 = vmatpush1.bf16.msra.mxu0 %v3048_v10  ;;  %v3139_v10 = vld [vmem:[%s4258_s21 + $0x68] sm:$0xff]  }
 0x42a   : > { %1642 = vmatprep.subr.bf16.mxu0 %v3053_v11  ;;  %v3140_v11 = vld [vmem:[%s4258_s21 + $0x28] sm:$0xff]  }
 0x42d   : > { %1643 = vmatpush1.bf16.msra.mxu0 %v3051_v12  ;;  %v1563_v12 = vld [vmem:[#allocation8] sm:$0x3] }
 0x42e   : > { %1644 = vmatprep.subr.bf16.mxu0 %v3056_v13  ;;  %v1568_v13 = vrot.slane %v1563_v12, %v3999_v53 }
 0x431   : > { %1645 = vmatpush1.bf16.msra.mxu0 %v3054_v14  ;;  %v1572_v14 = vrot.slane %v1563_v12, %v4004_v55 }
 0x432   : > { %1646 = vmatprep.subr.bf16.mxu0 %v3059_v15 }
 0x435   : > { %1647 = vmatpush1.bf16.msra.mxu0 %v3057_v16 }
 0x436   : > { %1648 = vmatprep.subr.bf16.mxu0 %v3062_v17 }
 0x439   : > { %1649 = vmatpush1.bf16.msra.mxu0 %v3060_v18 }
 0x43a   : > { %2813 = vmatprep.subr.bf16.mxu0 %v3129_v52  ;;  %v3154_v52 = vld [vmem:[#allocation12 + $0x30] ss:$8 sps:$4 sm:$0xff]  }
 0x4f7   : > { %v1531_v26 = vpop.f32.mrb[16].mxu0 }
 0x4f8   : > { %1542 = vrot.lane.b32.xlu1 %v1531_v26, %s3458_s18  ;;  %v2851_v27 = vpop.f32.mrb[17].mxu0  ;;  %v3116_v26 = vld [vmem:[#allocation14 + $0x14] ss:$8 sps:$4 sm:$0xff]  }
 0x4f9   : > { %v1534_v28 = vpop.f32.mrb[18].mxu0  ;;  %v3114_v27 = vld [vmem:[#allocation14 + $0x10] ss:$8 sps:$4 sm:$0xff]  }
 0x4fa   : > { %v2852_v30 = vpop.f32.mrb[19].mxu0  ;;  %v3119_v28 = vld [vmem:[#allocation14 + $0x24] ss:$8 sps:$4 sm:$0xff]  }
 0x4fb   : > { %v3122_v30 = vld [vmem:[#allocation14 + $0x34] ss:$8 sps:$4 sm:$0xff]  }
 0x56a   : > { %v1543_v56 = vpop.permute.xlu1 %1542 }
 0x56b   : > { %v1547_v57 = vsel %vm1546_vm8, %v1545_v54, %v1543_v56  ;;  %v3145_v56 = vld [vmem:[#allocation12] ss:$8 sps:$4 sm:$0xff]  }
 0x56c   : > { %1549 = vst.msk [vmem:[%s829_s13] sm:$0xff] %vm1548_vm9, %v1547_v57  ;;  %v4099_v58 = vpack.c.bf16 %v1547_v57, %v1547_v57 }
 0x56e   : > { %2704 = vmatmul.mubr.msk.bf16.vlgmr.msra.gmra.mrb[20].mxu0 %vm1548_vm9, %v4099_v58 }
 0x56f   : > { %2814 = vmatpush3.bf16.msra.mxu0 %v3130_v0  ;;  %v3159_v0 = vld [vmem:[#allocation12 + $0x44] ss:$8 sps:$4 sm:$0xff]  }
 0x570   : > { %2815 = vmatprep.subr.bf16.mxu0 %v3131_v1  ;;  %v3157_v1 = vld [vmem:[#allocation12 + $0x40] ss:$8 sps:$4 sm:$0xff]  }
 0x573   : > { %2816 = vmatpush3.bf16.msra.mxu0 %v3132_v3 }
 0x574   : > { %2817 = vmatprep.subr.bf16.mxu0 %v3133_v4 }
 0x577   : > { %2818 = vmatpush3.bf16.msra.mxu0 %v3134_v5 }
 0x578   : > { %2819 = vmatprep.subr.bf16.mxu0 %v3135_v6  ;;  %v3160_v6 = vld [vmem:[#allocation12 + $0x50] ss:$8 sps:$4 sm:$0xff]  }
 0x57b   : > { %2820 = vmatpush3.bf16.msra.mxu0 %v3136_v8 }
 0x57c   : > { %2821 = vmatprep.subr.bf16.mxu0 %v3137_v9 }
 0x57f   : > { %2822 = vmatpush3.bf16.msra.mxu0 %v3138_v7  ;;  %v2737_v7 = vld [vmem:[#allocation3] ss:$0 sm:$0xff] }
 0x580   : > { %2823 = vmatprep.subr.bf16.mxu0 %v3139_v10 }
 0x583   : > { %2824 = vmatpush3.bf16.msra.mxu0 %v3140_v11 }
 0x584   : > { %2825 = vmatprep.subr.bf16.mxu0 %v3141_v36 }
 0x587   : > { %2826 = vmatpush3.bf16.msra.mxu0 %v3142_v37 }
 0x588   : > { %2827 = vmatprep.subr.bf16.mxu0 %v3143_v38 }
 0x58b   : > { %2828 = vmatpush3.bf16.msra.mxu0 %v3144_v39 }
 0x58c   : > { %2193 = vmatprep.subr.bf16.mxu0 %v3147_v40 }
 0x641   : > { %v1672_v15 = vpop.f32.mrb[20].mxu0 }
 0x642   : > { %v1673_v16 = vadd.f32 %v1672_v15, %v1568_v13  ;;  %v1674_v17 = vpop.f32.mrb[21].mxu0  ;;  %v2121_v15 = vld [vmem:[#allocation15] sm:$0x3] }
 0x643   : > { %v1675_v18 = vadd.f32 %v1674_v17, %v1572_v14  ;;  %v1676_v19 = vpop.f32.mrb[22].mxu0  ;;  %v2130_v17 = vrot.slane %v2121_v15, %v4004_v55 }
 0x644   : > { %v1679_v20 = vmax.f32 %v1673_v16, 0.0  ;;  %v1677_v21 = vpop.f32.mrb[23].mxu0  ;;  %v2126_v16 = vrot.slane %v2121_v15, %v3999_v53 }
 0x645   : > { %v1680_v22 = vmax.f32 %v1675_v18, 0.0 }
 0x646   : > { %v1681_v25 = vpack.c.bf16 %v1679_v20, %v1679_v20 }
 0x647   : > { %v1682_v23 = vpack.c.bf16 %v1680_v22, %v1680_v22 }
 0x649   : > { %1919 = vmatprep.mubr.bf16.mxu1 %v1682_v23 }
 0x64a   : > { %1920 = vmatmul.mubr.bf16.vlgmr.msra.gmra.mrb[4].mxu1 %v1681_v25 }
 0x64b   : > { %2309 = vmatpush1.bf16.msra.mxu1 %v3111_v24  ;;  %2340 = vmatprep.mubr.bf16.mxu1 %v3454_v2 }
 0x64c   : > { %2310 = vmatprep.subr.bf16.mxu1 %v3116_v26 }
 0x64f   : > { %2311 = vmatpush1.bf16.msra.mxu1 %v3114_v27 }
 0x650   : > { %2312 = vmatprep.subr.bf16.mxu1 %v3119_v28 }
 0x653   : > { %2313 = vmatpush1.bf16.msra.mxu1 %v3117_v29 }
 0x654   : > { %2314 = vmatprep.subr.bf16.mxu1 %v3122_v30 }
 0x657   : > { %2315 = vmatpush1.bf16.msra.mxu1 %v3120_v31 }
 0x658   : > { %2316 = vmatprep.subr.bf16.mxu1 %v3125_v32 }
 0x65b   : > { %2317 = vmatpush1.bf16.msra.mxu1 %v3123_v33 }
 0x65c   : > { %2318 = vmatprep.subr.bf16.mxu1 %v3128_v34 }
 0x65f   : > { %2319 = vmatpush1.bf16.msra.mxu1 %v3126_v35 }
 0x662   : > { %2779 = vmatmul.mubr.msk.bf16.vlgmr.msra.gmra.mrb[8].mxu1 %vm1548_vm9, %v4099_v58 }
 0x71d   : > { %v1921_v44 = vpop.f32.mrb[4].mxu1 }
 0x71e   : > { %v1922_v45 = vadd.f32 %v1921_v44, %v1720_v42  ;;  %v1923_v46 = vpop.f32.mrb[5].mxu1 }
 0x71f   : > { %v1924_v47 = vadd.f32 %v1923_v46, %v1724_v43  ;;  %v1925_v48 = vpop.f32.mrb[6].mxu1 }
 0x720   : > { %v1928_v49 = vmax.f32 %v1922_v45, 0.0  ;;  %v1926_v50 = vpop.f32.mrb[7].mxu1 }
 0x721   : > { %v1929_v51 = vmax.f32 %v1924_v47, 0.0 }
 0x722   : > { %v1930_v57 = vpack.c.bf16 %v1928_v49, %v1928_v49 }
 0x723   : > { %v1931_v54 = vpack.c.bf16 %v1929_v51, %v1929_v51 }
 0x725   : > { %2099 = vmatprep.mubr.bf16.mxu0 %v1931_v54 }
 0x726   : > { %2100 = vmatmul.mubr.bf16.vlgmr.msra.gmra.mrb[24].mxu0 %v1930_v57 }
 0x727   : > { %2194 = vmatpush1.bf16.msra.mxu0 %v3145_v56  ;;  %2225 = vmatprep.mubr.bf16.mxu0 %v3454_v2  ;;  %v3162_v2 = vld [vmem:[#allocation12 + $0x54] ss:$8 sps:$4 sm:$0xff]  }
 0x728   : > { %2195 = vmatprep.subr.bf16.mxu0 %v3150_v59 }
 0x72b   : > { %2196 = vmatpush1.bf16.msra.mxu0 %v3148_v60 }
 0x72c   : > { %2197 = vmatprep.subr.bf16.mxu0 %v3153_v61 }
 0x72f   : > { %2198 = vmatpush1.bf16.msra.mxu0 %v3151_v62 }
 0x730   : > { %2199 = vmatprep.subr.bf16.mxu0 %v3156_v63 }
 0x733   : > { %2200 = vmatpush1.bf16.msra.mxu0 %v3154_v52 }
 0x734   : > { %2201 = vmatprep.subr.bf16.mxu0 %v3159_v0 }
 0x735   : > { %v2342_v3 = vpop.f32.mrb[8].mxu1 }
 0x736   : > { %2349 = vst [vmem:[%s843_s23] sm:$0xff] %v2342_v3  ;;  %v2344_v4 = vpop.f32.mrb[9].mxu1 }
 0x737   : > { %2350 = vst [vmem:[%s843_s23 + $0x8] sm:$0xff] %v2344_v4  ;;  %2202 = vmatpush1.bf16.msra.mxu0 %v3157_v1  ;;  %v2346_v5 = vpop.f32.mrb[10].mxu1 }
 0x738   : > { %v2347_v8 = vpop.f32.mrb[11].mxu1  ;;  %2203 = vmatprep.subr.bf16.mxu0 %v3162_v2 }
 0x73b   : > { %2204 = vmatpush1.bf16.msra.mxu0 %v3160_v6 }
 0x73e   : > { %2766 = vmatmul.mubr.msk.bf16.vlgmr.msra.gmra.mrb[28].mxu0 %vm1548_vm9, %v4099_v58 }
 0x7f9   : > { %v2829_v9 = vpop.f32.mrb[24].mxu0 }
 0x7fa   : > { %v2830_v10 = vpop.f32.mrb[25].mxu0 }
 0x7fb   : > { %v2831_v11 = vadd.f32 %v2830_v10, %v2829_v9  ;;  %v2832_v12 = vpop.f32.mrb[26].mxu0 }
 0x7fc   : > { %v2833_v13 = vpop.f32.mrb[27].mxu0 }
 0x7fd   : > { %v2102_v14 = vadd.f32 %v2831_v11, %v2737_v7 }
 0x7ff   : > { %2108 = vst.msk [vmem:[%s833_s0] sm:$0xff] %vm2107_vm10, %v2102_v14 }
 0x811   : > { %v2227_v58 = vpop.f32.mrb[28].mxu0 }
 0x812   : > { %v2228_v18 = vadd.f32 %v2227_v58, %v2126_v16  ;;  %v2229_v19 = vpop.f32.mrb[29].mxu0 }
 0x813   : > { %v2230_v20 = vadd.f32 %v2229_v19, %v2130_v17  ;;  %v2231_v21 = vpop.f32.mrb[30].mxu0 }
 0x814   : > { %2234 = vst [vmem:[%s838_s8] sm:$0xff] %v2228_v18  ;;  %v2232_v22 = vpop.f32.mrb[31].mxu0 }
 0x815   : > { %2235 = vst [vmem:[%s838_s8 + $0x8] sm:$0xff] %v2230_v20 }
 0x816 PF: > { %p40_p10 = scmp.ge.s32.totalorder %s3779_s5, 4   ;;  %s4262_s3 = smov %s3432_s28 }
 0x817   : > { %s4263_s28 = smov %s3436_s29  ;;  %s4264_s29 = smov %s3790_s25 }
 0x818   : > { %s4265_s0 = smov %s3779_s5  ;;  %42 = sbr.rel (!%p40_p10) target bundleno = 21 (0x15), region = 202 }
 0x81f   :  { %2416 = vsyncpa [#allocation5], 1 }
 0x820   :  { %2418 = vsyncpa [#allocation5 + $0x1], 1 }
 0x821   :  { %2419 = vsyncpa [#allocation7], 1 }
 0x822   :  { %2420 = vsyncpa [#allocation10], 1 }
 0x823   :  { %2421 = vsyncpa [#allocation13], 1 }
 0x824   :  { %2422 = vsyncpa [#allocation16], 1 }

</bundles_post_ra>
